<compile_context>
chip_gen: v7x
topology: tpu7x:2x2x1
jax: 0.10.0
libtpu: 0.0.40
codegen_flags: <defaults>
</compile_context>

<pallas_src>
import functools

import jax
import jax.numpy as jnp
from jax.experimental import pallas as pl
from jax.experimental.pallas import tpu as pltpu

# ---------------------------------------------------------------------------
# Layer "modes" (Linear -> [BN] -> activation epilogues). BN folded to (s, t).
# ---------------------------------------------------------------------------
MODE_LINEAR = 0        # out = h                           (nn.Linear)
MODE_BN_RELU = 1       # out = relu(h*s + t)               (Linear->BN->ReLU->Dropout)
MODE_RELU_BN_SIG = 2   # out = sigmoid(relu(h)*s + t)      (Linear->ReLU->BN->Sigmoid->Dropout)
MODE_SIGMOID = 3       # out = sigmoid(h)                  (Linear->Sigmoid)
MODE_BN_RELU_SIG = 4   # out = sigmoid(relu(h*s + t))      (Linear->BN->ReLU->Dropout->Sigmoid)


def _round_up(x, m):
    return ((x + m - 1) // m) * m


def _vmem_budget_bytes():
    """Generation-aware VMEM budget (v5e/v6e: 128 MiB, v7x: 64 MiB per core)."""
    cap = 64 * 1024 * 1024  # conservative fallback == v7x per-core capacity
    try:
        cap = int(pltpu.get_tpu_info().vmem_capacity_bytes)
    except Exception:
        pass
    return min(int(cap * 0.78), 112 * 1024 * 1024)


_VMEM_BUDGET = _vmem_budget_bytes()


def _pick_tile(dim_pad, bytes_per_unit, budget_bytes):
    """Largest 128*2^k tile dividing dim_pad with tile*bytes_per_unit <= budget."""
    for t in (8192, 4096, 2048, 1024, 512, 256, 128):
        if t <= dim_pad and dim_pad % t == 0 and t * bytes_per_unit <= budget_bytes:
            return t
    return 128  # dim_pad is always a multiple of 128; TODO(synk): 2-D tile fallback


def _apply_epilogue(h, mode, s_ref, t_ref):
    """h: f32 pre-activation; s_ref/t_ref: folded-BN refs/arrays (or None)."""
    if mode == MODE_LINEAR:
        return h
    if mode == MODE_SIGMOID:
        return jax.nn.sigmoid(h)
    s = s_ref[...]
    t = t_ref[...]
    if mode == MODE_BN_RELU:
        return jnp.maximum(h * s + t, 0.0)
    if mode == MODE_RELU_BN_SIG:
        return jax.nn.sigmoid(jnp.maximum(h, 0.0) * s + t)
    if mode == MODE_BN_RELU_SIG:
        return jax.nn.sigmoid(jnp.maximum(h * s + t, 0.0))
    raise ValueError(f"bad mode {mode}")


# ---------------------------------------------------------------------------
# Kernel 1: both encoder branches fused.  grid = (branch=2 [parallel],
# K tiles of the first layer [arbitrary]).  First-layer matmul accumulated in
# an f32 VMEM scratch; the rest of the chain + fused [fc_mu||fc_log_var] head
# + reparameterize run at the last K step.  Outputs stacked over the branch.
# ---------------------------------------------------------------------------
def _encoder_kernel(*refs, n_layers, modes, bn_flags, latent_pad):
    idx = 0
    x_ref = refs[idx]; idx += 1
    layers = []
    for i in range(n_layers):
        w, b = refs[idx], refs[idx + 1]; idx += 2
        if bn_flags[i]:
            s, t = refs[idx], refs[idx + 1]; idx += 2
        else:
            s = t = None
        layers.append((w, b, s, t))
    wh_ref, bh_ref, eps_ref = refs[idx], refs[idx + 1], refs[idx + 2]; idx += 3
    mu_ref, lv_ref, z_ref = refs[idx], refs[idx + 1], refs[idx + 2]; idx += 3
    acc_ref = refs[idx]

    k = pl.program_id(1)
    nk = pl.num_programs(1)

    @pl.when(k == 0)
    def _init():
        acc_ref[...] = jnp.zeros_like(acc_ref)

    # First-layer partial matmul for this K tile (bf16 x bf16 -> f32 accumulate).
    acc_ref[...] += jnp.dot(x_ref[...], layers[0][0][...],
                            preferred_element_type=jnp.float32)

    @pl.when(k == nk - 1)
    def _finalize():
        _, b0, s0, t0 = layers[0]
        h = _apply_epilogue(acc_ref[...] + b0[...], modes[0], s0, t0)
        for i in range(1, n_layers):
            w, b, s, t = layers[i]
            h = jnp.dot(h.astype(jnp.bfloat16), w[...],
                        preferred_element_type=jnp.float32) + b[...]
            h = _apply_epilogue(h, modes[i], s, t)
        # Fused mu || log_var head (single lane-dense matmul) + reparam epilogue.
        heads = jnp.dot(h.astype(jnp.bfloat16), wh_ref[...],
                        preferred_element_type=jnp.float32) + bh_ref[...]
        mu = heads[:, :latent_pad]
        lv = heads[:, latent_pad:2 * latent_pad]
        mu_ref[...] = mu
        lv_ref[...] = lv
        z_ref[...] = (mu + eps_ref[...] * jnp.exp(0.5 * lv)).astype(z_ref.dtype)


def encoder_branches_forward(branch, x_pad, eps_pad, *, latent_pad, budget):
    layers = branch["layers"]
    heads_w, heads_b = branch["heads"]
    batch_pad, in_pad = x_pad.shape
    out1_pad = layers[0]["w"].shape[2]
    assert layers[0]["w"].shape[1] == in_pad
    # tk such that the double-buffered bf16 W0 block uses <= ~1/3 of the budget.
    tk = _pick_tile(in_pad, 4 * out1_pad, budget // 3)
    grid = (2, in_pad // tk)

    def const3(arr):
        def im(br, k):
            return (br, 0, 0)
        return pl.BlockSpec((None,) + arr.shape[1:], im)

    inputs = [x_pad]
    in_specs = [pl.BlockSpec((batch_pad, tk), lambda br, k: (0, k))]
    modes, bn_flags = [], []

    # Layer 0: K-tiled weight (branch-stacked).
    L0 = layers[0]
    inputs += [L0["w"], L0["b"]]
    in_specs += [pl.BlockSpec((None, tk, out1_pad), lambda br, k: (br, k, 0)),
                 const3(L0["b"])]
    if L0["has_bn"]:
        inputs += [L0["s"], L0["t"]]
        in_specs += [const3(L0["s"]), const3(L0["t"])]
    modes.append(L0["mode"]); bn_flags.append(L0["has_bn"])

    # Remaining layers: fully resident (small), fetched once per branch.
    for L in layers[1:]:
        inputs += [L["w"], L["b"]]
        in_specs += [const3(L["w"]), const3(L["b"])]
        if L["has_bn"]:
            inputs += [L["s"], L["t"]]
            in_specs += [const3(L["s"]), const3(L["t"])]
        modes.append(L["mode"]); bn_flags.append(L["has_bn"])

    inputs += [heads_w, heads_b, eps_pad]
    in_specs += [const3(heads_w), const3(heads_b), const3(eps_pad)]

    def out_spec():
        def im(br, k):
            return (br, 0, 0)
        return pl.BlockSpec((None, batch_pad, latent_pad), im)

    out_shape = [jax.ShapeDtypeStruct((2, batch_pad, latent_pad), jnp.float32),   # mu
                 jax.ShapeDtypeStruct((2, batch_pad, latent_pad), jnp.float32),   # log_var
                 jax.ShapeDtypeStruct((2, batch_pad, latent_pad), jnp.bfloat16)]  # z
    out_specs = [out_spec(), out_spec(), out_spec()]

    kernel = functools.partial(_encoder_kernel, n_layers=len(layers),
                               modes=tuple(modes), bn_flags=tuple(bn_flags),
                               latent_pad=latent_pad)
    mu, lv, z = pl.pallas_call(
        kernel,
        grid=grid,
        out_shape=out_shape,
        in_specs=in_specs,
        out_specs=out_specs,
        scratch_shapes=[pltpu.VMEM((batch_pad, out1_pad), jnp.float32)],
        compiler_params=pltpu.CompilerParams(
            dimension_semantics=("parallel", "arbitrary"),
            vmem_limit_bytes=budget),
    )(*inputs)
    return mu, lv, z


# ---------------------------------------------------------------------------
# Kernel 2: decoder_rna + mlp from the stacked z.  grid = (N tiles of the wide
# last decoder layer,) marked "parallel".  Small dec/mlp layers are resident
# and recomputed per tile (cheap); decoded_rna is written bf16 tile-by-tile.
# ---------------------------------------------------------------------------
def _decoder_mlp_kernel(*refs, n_dec_small, dec_modes, dec_bn, dec_split,
                        last_mode, n_mlp, mlp_modes, mlp_bn, mlp_split):
    idx = 0
    z_ref = refs[idx]; idx += 1

    def parse(n, bn_flags):
        nonlocal idx
        out = []
        for i in range(n):
            w, b = refs[idx], refs[idx + 1]; idx += 2
            if bn_flags[i]:
                s, t = refs[idx], refs[idx + 1]; idx += 2
            else:
                s = t = None
            out.append((w, b, s, t))
        return out

    dec_layers = parse(n_dec_small, dec_bn)
    wl_ref, bl_ref = refs[idx], refs[idx + 1]; idx += 2
    mlp_layers = parse(n_mlp, mlp_bn)
    dec_out_ref, mlp_out_ref = refs[idx], refs[idx + 1]

    z0 = z_ref[0]   # shared latent  (bf16)
    z1 = z_ref[1]   # private latent (bf16)

    def run_chain(layer_refs, modes, splits):
        h = None
        for (w, b, s, t), mode, split in zip(layer_refs, modes, splits):
            if split:  # consumes [z_shared | z_private] via branch-split weight
                pre = (jnp.dot(z0, w[0], preferred_element_type=jnp.float32) +
                       jnp.dot(z1, w[1], preferred_element_type=jnp.float32))
            else:
                pre = jnp.dot(h.astype(jnp.bfloat16), w[...],
                              preferred_element_type=jnp.float32)
            h = _apply_epilogue(pre + b[...], mode, s, t)
        return h

    h_dec = run_chain(dec_layers, dec_modes, dec_split)
    dec_tile = _apply_epilogue(
        jnp.dot(h_dec.astype(jnp.bfloat16), wl_ref[...],
                preferred_element_type=jnp.float32) + bl_ref[...],
        last_mode, None, None)
    dec_out_ref[...] = dec_tile.astype(dec_out_ref.dtype)

    mlp_h = run_chain(mlp_layers, mlp_modes, mlp_split)
    mlp_out_ref[...] = mlp_h.astype(mlp_out_ref.dtype)


def decoder_mlp_forward(z_stacked, dec_chain, mlp_chain, budget):
    assert dec_chain[0].get("split") and mlp_chain[0].get("split")
    batch_pad = z_stacked.shape[1]
    dec_last = dec_chain[-1]
    d_last_pad, rna_pad = dec_last["w"].shape
    tn = _pick_tile(rna_pad, 4 * d_last_pad, budget // 4)
    grid = (rna_pad // tn,)

    def const(arr):
        n = arr.ndim
        def im(i):
            return (0,) * n
        return pl.BlockSpec(arr.shape, im)

    inputs, in_specs = [z_stacked], [const(z_stacked)]

    dec_modes, dec_bn, dec_split = [], [], []
    for L in dec_chain[:-1]:
        inputs += [L["w"], L["b"]]
        in_specs += [const(L["w"]), const(L["b"])]
        if L["has_bn"]:
            inputs += [L["s"], L["t"]]
            in_specs += [const(L["s"]), const(L["t"])]
        dec_modes.append(L["mode"]); dec_bn.append(L["has_bn"])
        dec_split.append(L.get("split", False))

    inputs += [dec_last["w"], dec_last["b"]]
    in_specs += [pl.BlockSpec((d_last_pad, tn), lambda i: (0, i)),
                 pl.BlockSpec((1, tn), lambda i: (0, i))]

    mlp_modes, mlp_bn, mlp_split = [], [], []
    for L in mlp_chain:
        inputs += [L["w"], L["b"]]
        in_specs += [const(L["w"]), const(L["b"])]
        if L["has_bn"]:
            inputs += [L["s"], L["t"]]
            in_specs += [const(L["s"]), const(L["t"])]
        mlp_modes.append(L["mode"]); mlp_bn.append(L["has_bn"])
        mlp_split.append(L.get("split", False))

    nc_pad = mlp_chain[-1]["w"].shape[-1]
    out_shape = [jax.ShapeDtypeStruct((batch_pad, rna_pad), jnp.bfloat16),
                 jax.ShapeDtypeStruct((batch_pad, nc_pad), jnp.float32)]
    out_specs = [pl.BlockSpec((batch_pad, tn), lambda i: (0, i)),
                 pl.BlockSpec((batch_pad, nc_pad), lambda i: (0, 0))]

    kernel = functools.partial(
        _decoder_mlp_kernel,
        n_dec_small=len(dec_chain) - 1, dec_modes=tuple(dec_modes),
        dec_bn=tuple(dec_bn), dec_split=tuple(dec_split),
        last_mode=dec_last["mode"],
        n_mlp=len(mlp_chain), mlp_modes=tuple(mlp_modes),
        mlp_bn=tuple(mlp_bn), mlp_split=tuple(mlp_split))
    dec_out, mlp_out = pl.pallas_call(
        kernel,
        grid=grid,
        out_shape=out_shape,
        in_specs=in_specs,
        out_specs=out_specs,
        compiler_params=pltpu.CompilerParams(
            dimension_semantics=("parallel",), vmem_limit_bytes=budget),
    )(*inputs)
    return dec_out, mlp_out


# ---------------------------------------------------------------------------
# Kernel 3 (methylation path): decoder_methylation, K/N-tiled streamed matmul
# with f32 accumulator.  grid = (N tiles [parallel], K tiles [arbitrary]).
# ---------------------------------------------------------------------------
def _meth_decoder_kernel(x_ref, w_ref, b_ref, s_ref, t_ref, o_ref, acc_ref):
    k = pl.program_id(1)

    @pl.when(k == 0)
    def _init():
        acc_ref[...] = jnp.zeros_like(acc_ref)

    acc_ref[...] += jnp.dot(x_ref[...], w_ref[...],
                            preferred_element_type=jnp.float32)

    @pl.when(k == pl.num_programs(1) - 1)
    def _finalize():
        h = acc_ref[...] + b_ref[...]
        o_ref[...] = jax.nn.sigmoid(
            jnp.maximum(h * s_ref[...] + t_ref[...], 0.0)).astype(o_ref.dtype)


def meth_decoder_forward(decoded_rna_pad, ML, budget):
    batch_pad, rna_pad = decoded_rna_pad.shape
    meth_pad = ML["w"].shape[1]
    tk = _pick_tile(rna_pad, 1, 512)  # K tile over decoded_rna features (<=512)
    # N tile: double-buffered bf16 weight column + f32 accumulator column.
    tn = _pick_tile(meth_pad, 4 * tk + 4 * batch_pad, budget // 3)
    grid = (meth_pad // tn, rna_pad // tk)

    return pl.pallas_call(
        _meth_decoder_kernel,
        grid=grid,
        out_shape=jax.ShapeDtypeStruct((batch_pad, meth_pad), jnp.bfloat16),
        in_specs=[pl.BlockSpec((batch_pad, tk), lambda j, k: (0, k)),
                  pl.BlockSpec((tk, tn), lambda j, k: (k, j)),
                  pl.BlockSpec((1, tn), lambda j, k: (0, j)),
                  pl.BlockSpec((1, tn), lambda j, k: (0, j)),
                  pl.BlockSpec((1, tn), lambda j, k: (0, j))],
        out_specs=pl.BlockSpec((batch_pad, tn), lambda j, k: (0, j)),
        scratch_shapes=[pltpu.VMEM((batch_pad, tn), jnp.float32)],
        compiler_params=pltpu.CompilerParams(
            dimension_semantics=("parallel", "arbitrary"),
            vmem_limit_bytes=budget),
    )(decoded_rna_pad, ML["w"], ML["b"], ML["s"], ML["t"])


# ---------------------------------------------------------------------------
# Deterministic parameter init + lane padding (synthetic; mirrors __init__).
# ---------------------------------------------------------------------------
def _init_linear(key, in_dim, out_dim):
    kw, kb = jax.random.split(key)
    lim = 1.0 / (in_dim ** 0.5)
    w = jax.random.uniform(kw, (in_dim, out_dim), jnp.float32, -lim, lim)
    b = jax.random.uniform(kb, (1, out_dim), jnp.float32, -lim, lim)
    return w, b


def _init_bn_folded(key, dim, eps=1e-5):
    k1, k2, k3, k4 = jax.random.split(key, 4)
    gamma = jax.random.uniform(k1, (1, dim), jnp.float32, 0.5, 1.5)
    beta = jax.random.uniform(k2, (1, dim), jnp.float32, -0.1, 0.1)
    rmean = jax.random.uniform(k3, (1, dim), jnp.float32, -0.1, 0.1)
    rvar = jax.random.uniform(k4, (1, dim), jnp.float32, 0.5, 1.5)
    s = gamma / jnp.sqrt(rvar + eps)
    t = beta - rmean * s
    return s, t


def _pad_row(v, c_pad, fill=0.0):
    out = jnp.full((1, c_pad), fill, jnp.float32)
    return out.at[:, :v.shape[1]].set(v)


def _pad_weight(w, in_pad, out_pad):
    wp = jnp.zeros((in_pad, out_pad), jnp.float32)
    wp = wp.at[:w.shape[0], :w.shape[1]].set(w)
    return wp.astype(jnp.bfloat16)


def _make_layer(key, in_dim, out_dim, mode, has_bn, in_pad, out_pad):
    kl, kb = jax.random.split(key)
    w, b = _init_linear(kl, in_dim, out_dim)
    L = {"w": _pad_weight(w, in_pad, out_pad), "b": _pad_row(b, out_pad, 0.0),
         "mode": mode, "has_bn": has_bn}
    if has_bn:
        s, t = _init_bn_folded(kb, out_dim)
        L["s"] = _pad_row(s, out_pad, 1.0)
        L["t"] = _pad_row(t, out_pad, 0.0)
    return L


def _make_split_layer(key, latent_dim, latent_pad, out_dim, out_pad, mode, has_bn):
    """Layer consuming [z_shared | z_private]: weight stored branch-split
    (2, latent_pad, out_pad) so the kernel takes the stacked z directly."""
    kl, kb = jax.random.split(key)
    w, b = _init_linear(kl, 2 * latent_dim, out_dim)
    ws = jnp.zeros((2, latent_pad, out_pad), jnp.float32)
    ws = ws.at[0, :latent_dim, :out_dim].set(w[:latent_dim])
    ws = ws.at[1, :latent_dim, :out_dim].set(w[latent_dim:])
    L = {"w": ws.astype(jnp.bfloat16), "b": _pad_row(b, out_pad, 0.0),
         "mode": mode, "has_bn": has_bn, "split": True}
    if has_bn:
        s, t = _init_bn_folded(kb, out_dim)
        L["s"] = _pad_row(s, out_pad, 1.0)
        L["t"] = _pad_row(t, out_pad, 0.0)
    return L


def _make_heads(key_mu, key_lv, last_dim, last_pad, latent_dim, latent_pad):
    w_mu, b_mu = _init_linear(key_mu, last_dim, latent_dim)
    w_lv, b_lv = _init_linear(key_lv, last_dim, latent_dim)
    w = jnp.zeros((last_pad, 2 * latent_pad), jnp.float32)
    w = w.at[:last_dim, :latent_dim].set(w_mu)
    w = w.at[:last_dim, latent_pad:latent_pad + latent_dim].set(w_lv)
    b = jnp.zeros((1, 2 * latent_pad), jnp.float32)
    b = b.at[:, :latent_dim].set(b_mu)
    b = b.at[:, latent_pad:latent_pad + latent_dim].set(b_lv)
    return w.astype(jnp.bfloat16), b


def _stack_layers(a, b):
    assert a["mode"] == b["mode"] and a["has_bn"] == b["has_bn"]
    assert a["w"].shape == b["w"].shape
    L = {"w": jnp.stack([a["w"], b["w"]]), "b": jnp.stack([a["b"], b["b"]]),
         "mode": a["mode"], "has_bn": a["has_bn"]}
    if a["has_bn"]:
        L["s"] = jnp.stack([a["s"], b["s"]])
        L["t"] = jnp.stack([a["t"], b["t"]])
    return L


def init_params(key, rna_input_dim, methylation_input_dim,
                enc_meth_hidden_dim=None, enc_common_dims=(256, 128),
                latent_dim=50, dec_rna_dims=(128, 256),
                dec_meth_hidden_dim=None, mlp_dims=(128, 64), num_classes=21):
    enc_meth_hidden_dim = rna_input_dim if enc_meth_hidden_dim is None else enc_meth_hidden_dim
    dec_meth_hidden_dim = methylation_input_dim if dec_meth_hidden_dim is None else dec_meth_hidden_dim
    P = lambda d: _round_up(d, 128)
    keys = iter(jax.random.split(key, 64))
    latent_pad = P(latent_dim)
    last = enc_common_dims[-1]

    p = {"dims": dict(rna=rna_input_dim, meth=methylation_input_dim,
                      latent=latent_dim, num_classes=num_classes,
                      latent_pad=latent_pad)}

    # --- encoder building blocks (unstacked) ---
    enc_meth = _make_layer(next(keys), methylation_input_dim, enc_meth_hidden_dim,
                           MODE_RELU_BN_SIG, True,
                           P(methylation_input_dim), P(enc_meth_hidden_dim))

    def common_stack(in_dim):
        blocks, d = [], in_dim
        for dim in enc_common_dims:
            blocks.append(_make_layer(next(keys), d, dim, MODE_BN_RELU, True, P(d), P(dim)))
            d = dim
        return blocks

    enc_common = common_stack(rna_input_dim)
    heads_shared = _make_heads(next(keys), next(keys), last, P(last), latent_dim, latent_pad)

    enc_meth_priv = _make_layer(next(keys), methylation_input_dim, enc_meth_hidden_dim,
                                MODE_RELU_BN_SIG, True,
                                P(methylation_input_dim), P(enc_meth_hidden_dim))
    enc_meth_priv_common = common_stack(enc_meth_hidden_dim)
    heads_meth_priv = _make_heads(next(keys), next(keys), last, P(last), latent_dim, latent_pad)

    enc_rna_priv = common_stack(rna_input_dim)
    heads_rna_priv = _make_heads(next(keys), next(keys), last, P(last), latent_dim, latent_pad)

    def stack_branch(chain_s, heads_s, chain_p, heads_p, in_pad):
        layers = [_stack_layers(a, b) for a, b in zip(chain_s, chain_p)]
        heads = (jnp.stack([heads_s[0], heads_p[0]]),
                 jnp.stack([heads_s[1], heads_p[1]]))
        return {"layers": layers, "heads": heads, "in_pad": in_pad}

    p["enc_branches"] = {
        "methylation": stack_branch([enc_meth] + enc_common, heads_shared,
                                    [enc_meth_priv] + enc_meth_priv_common, heads_meth_priv,
                                    P(methylation_input_dim)),
        "rna": stack_branch(enc_common, heads_shared,
                            enc_rna_priv, heads_rna_priv, P(rna_input_dim)),
    }

    # --- decoder_rna (forward feeds z_concat = 2*latent_dim; follow data flow) ---
    dec = [_make_split_layer(next(keys), latent_dim, latent_pad,
                             dec_rna_dims[0], P(dec_rna_dims[0]), MODE_BN_RELU, True)]
    d = dec_rna_dims[0]
    for dim in dec_rna_dims[1:]:
        dec.append(_make_layer(next(keys), d, dim, MODE_BN_RELU, True, P(d), P(dim)))
        d = dim
    dec.append(_make_layer(next(keys), dec_rna_dims[-1], rna_input_dim, MODE_SIGMOID,
                           False, P(dec_rna_dims[-1]), P(rna_input_dim)))
    p["decoder_rna"] = dec

    p["decoder_methylation"] = _make_layer(next(keys), rna_input_dim, dec_meth_hidden_dim,
                                           MODE_BN_RELU_SIG, True,
                                           P(rna_input_dim), P(dec_meth_hidden_dim))

    # --- mlp (also fed z_concat) ---
    mlp = [_make_split_layer(next(keys), latent_dim, latent_pad,
                             mlp_dims[0], P(mlp_dims[0]), MODE_BN_RELU, True)]
    d = mlp_dims[0]
    for dim in mlp_dims[1:]:
        mlp.append(_make_layer(next(keys), d, dim, MODE_BN_RELU, True, P(d), P(dim)))
        d = dim
    mlp.append(_make_layer(next(keys), mlp_dims[-1], num_classes, MODE_LINEAR, False,
                           P(mlp_dims[-1]), P(num_classes)))
    p["mlp"] = mlp
    return p


# ---------------------------------------------------------------------------
# Forward pass (mirrors AutoencoderWithMLP.forward, inference mode).
# 2 pallas_calls for "rna", 3 for "methylation".
# ---------------------------------------------------------------------------
def forward(params, x, data_type, key):
    if data_type not in ("rna", "methylation"):
        raise ValueError(data_type)
    dims = params["dims"]
    latent, latent_pad = dims["latent"], dims["latent_pad"]
    batch = x.shape[0]
    batch_pad = _round_up(batch, 16)  # bf16 sublane-dense LHS
    budget = _VMEM_BUDGET

    branch = params["enc_branches"][data_type]
    in_pad = branch["in_pad"]
    x_pad = jnp.zeros((batch_pad, in_pad), jnp.bfloat16)
    x_pad = x_pad.at[:batch, :x.shape[1]].set(x.astype(jnp.bfloat16))

    eps = jax.random.normal(key, (2, batch, latent), jnp.float32)
    eps_pad = jnp.zeros((2, batch_pad, latent_pad), jnp.float32)
    eps_pad = eps_pad.at[:, :batch, :latent].set(eps)

    mu, lv, z = encoder_branches_forward(branch, x_pad, eps_pad,
                                         latent_pad=latent_pad, budget=budget)
    dec_rna_pad, mlp_out = decoder_mlp_forward(z, params["decoder_rna"],
                                               params["mlp"], budget)

    out = {"decoded_rna": dec_rna_pad[:batch, :dims["rna"]].astype(jnp.float32),
           "mlp_output": mlp_out[:batch, :dims["num_classes"]],
           "mu": mu[0, :batch, :latent], "log_var": lv[0, :batch, :latent],
           "mu_private": mu[1, :batch, :latent],
           "log_var_private": lv[1, :batch, :latent]}
    if data_type == "methylation":
        meth = meth_decoder_forward(dec_rna_pad, params["decoder_methylation"], budget)
        out["decoded_methylation"] = meth[:batch, :dims["meth"]].astype(jnp.float32)
    return out


# ---------------------------------------------------------------------------
# Pure-JAX reference (same padded params, same quantization points) for checks.
# ---------------------------------------------------------------------------
def _ref_forward(params, x, data_type, key):
    dims = params["dims"]
    latent, latent_pad = dims["latent"], dims["latent_pad"]
    batch = x.shape[0]
    batch_pad = _round_up(batch, 16)
    branch = params["enc_branches"][data_type]
    in_pad = branch["in_pad"]
    x_pad = jnp.zeros((batch_pad, in_pad), jnp.bfloat16)
    x_pad = x_pad.at[:batch, :x.shape[1]].set(x.astype(jnp.bfloat16))
    eps = jax.random.normal(key, (2, batch, latent), jnp.float32)
    eps_pad = jnp.zeros((2, batch_pad, latent_pad), jnp.float32)
    eps_pad = eps_pad.at[:, :batch, :latent].set(eps)

    def enc_branch(br):
        h = x_pad.astype(jnp.float32)
        for L in branch["layers"]:
            pre = jnp.dot(h.astype(jnp.bfloat16), L["w"][br],
                          preferred_element_type=jnp.float32) + L["b"][br]
            s = L["s"][br] if L["has_bn"] else None
            t = L["t"][br] if L["has_bn"] else None
            h = _apply_epilogue(pre, L["mode"], s, t)
        hw, hb = branch["heads"]
        heads = jnp.dot(h.astype(jnp.bfloat16), hw[br],
                        preferred_element_type=jnp.float32) + hb[br]
        mu = heads[:, :latent_pad]
        lv = heads[:, latent_pad:2 * latent_pad]
        z = (mu + eps_pad[br] * jnp.exp(0.5 * lv)).astype(jnp.bfloat16)
        return mu, lv, z

    mu0, lv0, z0 = enc_branch(0)
    mu1, lv1, z1 = enc_branch(1)

    def run_chain(chain):
        h = None
        for L in chain:
            if L.get("split", False):
                pre = (jnp.dot(z0, L["w"][0], preferred_element_type=jnp.float32) +
                       jnp.dot(z1, L["w"][1], preferred_element_type=jnp.float32))
            else:
                pre = jnp.dot(h.astype(jnp.bfloat16), L["w"],
                              preferred_element_type=jnp.float32)
            h = _apply_epilogue(pre + L["b"], L["mode"], L.get("s"), L.get("t"))
        return h

    dec = run_chain(params["decoder_rna"])
    mlp = run_chain(params["mlp"])
    out = {"decoded_rna": dec[:batch, :dims["rna"]],
           "mlp_output": mlp[:batch, :dims["num_classes"]],
           "mu": mu0[:batch, :latent], "log_var": lv0[:batch, :latent],
           "mu_private": mu1[:batch, :latent],
           "log_var_private": lv1[:batch, :latent]}
    if data_type == "methylation":
        ML = params["decoder_methylation"]
        pre = jnp.dot(dec.astype(jnp.bfloat16), ML["w"],
                      preferred_element_type=jnp.float32) + ML["b"]
        meth = _apply_epilogue(pre, ML["mode"], ML["s"], ML["t"])
        out["decoded_methylation"] = meth[:batch, :dims["meth"]]
    return out


if __name__ == "__main__":
    # Small, forward-consistent shapes.
    batch = 8
    rna_input_dim = 64
    methylation_input_dim = 80
    enc_common_dims = (64, 32)
    latent_dim = 16
    dec_rna_dims = (32, 64)
    mlp_dims = (32, 16)
    num_classes = 21

    root = jax.random.PRNGKey(0)
    k_param, k_xr, k_xm, k_eps_r, k_eps_m = jax.random.split(root, 5)

    params = init_params(k_param, rna_input_dim, methylation_input_dim,
                         enc_common_dims=enc_common_dims, latent_dim=latent_dim,
                         dec_rna_dims=dec_rna_dims, mlp_dims=mlp_dims,
                         num_classes=num_classes)

    x_rna = jax.random.normal(k_xr, (batch, rna_input_dim), dtype=jnp.float32)
    x_meth = jax.random.normal(k_xm, (batch, methylation_input_dim), dtype=jnp.float32)

    out_rna = forward(params, x_rna, "rna", k_eps_r)
    out_meth = forward(params, x_meth, "methylation", k_eps_m)
    jax.block_until_ready((out_rna, out_meth))

    assert out_rna["decoded_rna"].shape == (batch, rna_input_dim)
    assert out_rna["mlp_output"].shape == (batch, num_classes)
    assert out_rna["mu"].shape == (batch, latent_dim)
    assert out_meth["decoded_methylation"].shape == (batch, methylation_input_dim)
    for d in (out_rna, out_meth):
        for v in d.values():
            assert bool(jnp.all(jnp.isfinite(v)))

    # Numerical check against a pure-JAX reference on the same padded params.
    ref_rna = _ref_forward(params, x_rna, "rna", k_eps_r)
    ref_meth = _ref_forward(params, x_meth, "methylation", k_eps_m)
    for name, got, ref in (("rna", out_rna, ref_rna),
                           ("methylation", out_meth, ref_meth)):
        for kk, rv in ref.items():
            gv = got[kk]
            assert gv.shape == rv.shape, (name, kk, gv.shape, rv.shape)
            assert bool(jnp.allclose(gv, rv, rtol=3e-2, atol=3e-2)), (name, kk)

    print("KERNEL_OK")
</pallas_src>

<mosaic_0001>
module attributes {stable_mosaic.version = 11 : i64} {
  func.func @_encoder_kernel(%arg0: i32, %arg1: i32, %arg2: memref<16x128xbf16, #tpu.memory_space<vmem>>, %arg3: memref<1x128x128xbf16, #tpu.memory_space<vmem>>, %arg4: memref<1x1x128xf32, #tpu.memory_space<vmem>>, %arg5: memref<1x1x128xf32, #tpu.memory_space<vmem>>, %arg6: memref<1x1x128xf32, #tpu.memory_space<vmem>>, %arg7: memref<1x128x128xbf16, #tpu.memory_space<vmem>>, %arg8: memref<1x1x128xf32, #tpu.memory_space<vmem>>, %arg9: memref<1x1x128xf32, #tpu.memory_space<vmem>>, %arg10: memref<1x1x128xf32, #tpu.memory_space<vmem>>, %arg11: memref<1x128x256xbf16, #tpu.memory_space<vmem>>, %arg12: memref<1x1x256xf32, #tpu.memory_space<vmem>>, %arg13: memref<1x16x128xf32, #tpu.memory_space<vmem>>, %arg14: memref<1x16x128xf32, #tpu.memory_space<vmem>>, %arg15: memref<1x16x128xf32, #tpu.memory_space<vmem>>, %arg16: memref<1x16x128xbf16, #tpu.memory_space<vmem>>, %arg17: memref<16x128xf32, #tpu.memory_space<vmem>>) attributes {dimension_semantics = [#tpu.dimension_semantics<parallel>, #tpu.dimension_semantics<arbitrary>], iteration_bounds = array<i64: 2, 1>, scalar_prefetch = 0 : i64, scratch_operands = 1 : i64, tpu.core_type = #tpu.core_type<tc>, window_params = [{transform_indices = @transform_0, window_bounds = array<i64: 16, 128>}, {transform_indices = @transform_1, window_bounds = array<i64: 1, 128, 128>}, {transform_indices = @transform_2, window_bounds = array<i64: 1, 1, 128>}, {transform_indices = @transform_3, window_bounds = array<i64: 1, 1, 128>}, {transform_indices = @transform_4, window_bounds = array<i64: 1, 1, 128>}, {transform_indices = @transform_5, window_bounds = array<i64: 1, 128, 128>}, {transform_indices = @transform_6, window_bounds = array<i64: 1, 1, 128>}, {transform_indices = @transform_7, window_bounds = array<i64: 1, 1, 128>}, {transform_indices = @transform_8, window_bounds = array<i64: 1, 1, 128>}, {transform_indices = @transform_9, window_bounds = array<i64: 1, 128, 256>}, {transform_indices = @transform_10, window_bounds = array<i64: 1, 1, 256>}, {transform_indices = @transform_11, window_bounds = array<i64: 1, 16, 128>}, {transform_indices = @transform_12, window_bounds = array<i64: 1, 16, 128>}, {transform_indices = @transform_13, window_bounds = array<i64: 1, 16, 128>}, {transform_indices = @transform_14, window_bounds = array<i64: 1, 16, 128>}]} {
    %c0_i32 = arith.constant 0 : i32
    %0 = arith.cmpi eq, %arg1, %c0_i32 : i32
    %1 = arith.extui %0 : i1 to i32
    %c0_i32_0 = arith.constant 0 : i32
    %2 = arith.cmpi ne, %1, %c0_i32_0 : i32
    scf.if %2 {
      %cst_11 = arith.constant 0.000000e+00 : f32
      %13 = vector.broadcast %cst_11 : f32 to vector<16x128xf32>
      %c0_12 = arith.constant 0 : index
      %c0_13 = arith.constant 0 : index
      %14 = vector.load %arg17[%c0_12, %c0_13] : memref<16x128xf32, #tpu.memory_space<vmem>>, vector<16x128xf32>
      tpu.vector_store %arg17[%c0_12, %c0_13], %13 {strides = array<i32>} : memref<16x128xf32, #tpu.memory_space<vmem>>, vector<16x128xf32>,
    } else {
    }
    %c0 = arith.constant 0 : index
    %c0_1 = arith.constant 0 : index
    %3 = vector.load %arg17[%c0, %c0_1] : memref<16x128xf32, #tpu.memory_space<vmem>>, vector<16x128xf32>
    %c0_2 = arith.constant 0 : index
    %c0_3 = arith.constant 0 : index
    %4 = vector.load %arg2[%c0_2, %c0_3] : memref<16x128xbf16, #tpu.memory_space<vmem>>, vector<16x128xbf16>
    %c0_4 = arith.constant 0 : index
    %c0_5 = arith.constant 0 : index
    %c0_6 = arith.constant 0 : index
    %5 = vector.load %arg3[%c0_4, %c0_5, %c0_6] : memref<1x128x128xbf16, #tpu.memory_space<vmem>>, vector<1x128x128xbf16>
    %6 = vector.shape_cast %5 : vector<1x128x128xbf16> to vector<128x128xbf16>
    %cst = arith.constant dense<0.000000e+00> : vector<16x128xf32>
    %7 = tpu.matmul %4, %6, %cst {dimension_numbers = #tpu.dot_dimension_numbers<[1], [0], [0], [1], [0, 0, 1, 1], [], []>} : vector<16x128xbf16>, vector<128x128xbf16>, vector<16x128xf32> -> vector<16x128xf32>
    %8 = arith.addf %3, %7 : vector<16x128xf32>
    %c0_7 = arith.constant 0 : index
    %c0_8 = arith.constant 0 : index
    %9 = vector.load %arg17[%c0_7, %c0_8] : memref<16x128xf32, #tpu.memory_space<vmem>>, vector<16x128xf32>
    tpu.vector_store %arg17[%c0_7, %c0_8], %8 {strides = array<i32>} : memref<16x128xf32, #tpu.memory_space<vmem>>, vector<16x128xf32>,
    %c0_i32_9 = arith.constant 0 : i32
    %10 = arith.cmpi eq, %arg1, %c0_i32_9 : i32
    %11 = arith.extui %10 : i1 to i32
    %c0_i32_10 = arith.constant 0 : i32
    %12 = arith.cmpi ne, %11, %c0_i32_10 : i32
    scf.if %12 {
      %c0_11 = arith.constant 0 : index
      %c0_12 = arith.constant 0 : index
      %13 = vector.load %arg17[%c0_11, %c0_12] : memref<16x128xf32, #tpu.memory_space<vmem>>, vector<16x128xf32>
      %c0_13 = arith.constant 0 : index
      %c0_14 = arith.constant 0 : index
      %c0_15 = arith.constant 0 : index
      %14 = vector.load %arg4[%c0_13, %c0_14, %c0_15] : memref<1x1x128xf32, #tpu.memory_space<vmem>>, vector<1x1x128xf32>
      %15 = vector.shape_cast %14 : vector<1x1x128xf32> to vector<1x128xf32>
      %16 = vector.broadcast %15 : vector<1x128xf32> to vector<16x128xf32>
      %17 = arith.addf %13, %16 : vector<16x128xf32>
      %c0_16 = arith.constant 0 : index
      %c0_17 = arith.constant 0 : index
      %c0_18 = arith.constant 0 : index
      %18 = vector.load %arg5[%c0_16, %c0_17, %c0_18] : memref<1x1x128xf32, #tpu.memory_space<vmem>>, vector<1x1x128xf32>
      %19 = vector.shape_cast %18 : vector<1x1x128xf32> to vector<1x128xf32>
      %c0_19 = arith.constant 0 : index
      %c0_20 = arith.constant 0 : index
      %c0_21 = arith.constant 0 : index
      %20 = vector.load %arg6[%c0_19, %c0_20, %c0_21] : memref<1x1x128xf32, #tpu.memory_space<vmem>>, vector<1x1x128xf32>
      %21 = vector.shape_cast %20 : vector<1x1x128xf32> to vector<1x128xf32>
      %22 = vector.broadcast %19 : vector<1x128xf32> to vector<16x128xf32>
      %23 = arith.mulf %17, %22 : vector<16x128xf32>
      %24 = vector.broadcast %21 : vector<1x128xf32> to vector<16x128xf32>
      %25 = arith.addf %23, %24 : vector<16x128xf32>
      %cst_22 = arith.constant 0.000000e+00 : f32
      %26 = vector.broadcast %cst_22 : f32 to vector<16x128xf32>
      %27 = arith.maximumf %25, %26 : vector<16x128xf32>
      %28 = arith.truncf %27 : vector<16x128xf32> to vector<16x128xbf16>
      %c0_23 = arith.constant 0 : index
      %c0_24 = arith.constant 0 : index
      %c0_25 = arith.constant 0 : index
      %29 = vector.load %arg7[%c0_23, %c0_24, %c0_25] : memref<1x128x128xbf16, #tpu.memory_space<vmem>>, vector<1x128x128xbf16>
      %30 = vector.shape_cast %29 : vector<1x128x128xbf16> to vector<128x128xbf16>
      %cst_26 = arith.constant dense<0.000000e+00> : vector<16x128xf32>
      %31 = tpu.matmul %28, %30, %cst_26 {dimension_numbers = #tpu.dot_dimension_numbers<[1], [0], [0], [1], [0, 0, 1, 1], [], []>} : vector<16x128xbf16>, vector<128x128xbf16>, vector<16x128xf32> -> vector<16x128xf32>
      %c0_27 = arith.constant 0 : index
      %c0_28 = arith.constant 0 : index
      %c0_29 = arith.constant 0 : index
      %32 = vector.load %arg8[%c0_27, %c0_28, %c0_29] : memref<1x1x128xf32, #tpu.memory_space<vmem>>, vector<1x1x128xf32>
      %33 = vector.shape_cast %32 : vector<1x1x128xf32> to vector<1x128xf32>
      %34 = vector.broadcast %33 : vector<1x128xf32> to vector<16x128xf32>
      %35 = arith.addf %31, %34 : vector<16x128xf32>
      %c0_30 = arith.constant 0 : index
      %c0_31 = arith.constant 0 : index
      %c0_32 = arith.constant 0 : index
      %36 = vector.load %arg9[%c0_30, %c0_31, %c0_32] : memref<1x1x128xf32, #tpu.memory_space<vmem>>, vector<1x1x128xf32>
      %37 = vector.shape_cast %36 : vector<1x1x128xf32> to vector<1x128xf32>
      %c0_33 = arith.constant 0 : index
      %c0_34 = arith.constant 0 : index
      %c0_35 = arith.constant 0 : index
      %38 = vector.load %arg10[%c0_33, %c0_34, %c0_35] : memref<1x1x128xf32, #tpu.memory_space<vmem>>, vector<1x1x128xf32>
      %39 = vector.shape_cast %38 : vector<1x1x128xf32> to vector<1x128xf32>
      %40 = vector.broadcast %37 : vector<1x128xf32> to vector<16x128xf32>
      %41 = arith.mulf %35, %40 : vector<16x128xf32>
      %42 = vector.broadcast %39 : vector<1x128xf32> to vector<16x128xf32>
      %43 = arith.addf %41, %42 : vector<16x128xf32>
      %cst_36 = arith.constant 0.000000e+00 : f32
      %44 = vector.broadcast %cst_36 : f32 to vector<16x128xf32>
      %45 = arith.maximumf %43, %44 : vector<16x128xf32>
      %46 = arith.truncf %45 : vector<16x128xf32> to vector<16x128xbf16>
      %c0_37 = arith.constant 0 : index
      %c0_38 = arith.constant 0 : index
      %c0_39 = arith.constant 0 : index
      %47 = vector.load %arg11[%c0_37, %c0_38, %c0_39] : memref<1x128x256xbf16, #tpu.memory_space<vmem>>, vector<1x128x256xbf16>
      %48 = vector.shape_cast %47 : vector<1x128x256xbf16> to vector<128x256xbf16>
      %cst_40 = arith.constant dense<0.000000e+00> : vector<16x256xf32>
      %49 = tpu.matmul %46, %48, %cst_40 {dimension_numbers = #tpu.dot_dimension_numbers<[1], [0], [0], [1], [0, 0, 1, 1], [], []>} : vector<16x128xbf16>, vector<128x256xbf16>, vector<16x256xf32> -> vector<16x256xf32>
      %c0_41 = arith.constant 0 : index
      %c0_42 = arith.constant 0 : index
      %c0_43 = arith.constant 0 : index
      %50 = vector.load %arg12[%c0_41, %c0_42, %c0_43] : memref<1x1x256xf32, #tpu.memory_space<vmem>>, vector<1x1x256xf32>
      %51 = vector.shape_cast %50 : vector<1x1x256xf32> to vector<1x256xf32>
      %52 = vector.broadcast %51 : vector<1x256xf32> to vector<16x256xf32>
      %53 = arith.addf %49, %52 : vector<16x256xf32>
      %54 = vector.extract_strided_slice %53 {offsets = [0, 0], sizes = [16, 128], strides = [1, 1]} : vector<16x256xf32> to vector<16x128xf32>
      %55 = vector.extract_strided_slice %53 {offsets = [0, 128], sizes = [16, 128], strides = [1, 1]} : vector<16x256xf32> to vector<16x128xf32>
      %c0_44 = arith.constant 0 : index
      %c0_45 = arith.constant 0 : index
      %c0_46 = arith.constant 0 : index
      %56 = vector.load %arg14[%c0_44, %c0_45, %c0_46] : memref<1x16x128xf32, #tpu.memory_space<vmem>>, vector<1x16x128xf32>
      %57 = vector.shape_cast %56 : vector<1x16x128xf32> to vector<16x128xf32>
      %58 = vector.shape_cast %54 : vector<16x128xf32> to vector<1x16x128xf32>
      tpu.vector_store %arg14[%c0_44, %c0_45, %c0_46], %58 {strides = array<i32>} : memref<1x16x128xf32, #tpu.memory_space<vmem>>, vector<1x16x128xf32>,
      %c0_47 = arith.constant 0 : index
      %c0_48 = arith.constant 0 : index
      %c0_49 = arith.constant 0 : index
      %59 = vector.load %arg15[%c0_47, %c0_48, %c0_49] : memref<1x16x128xf32, #tpu.memory_space<vmem>>, vector<1x16x128xf32>
      %60 = vector.shape_cast %59 : vector<1x16x128xf32> to vector<16x128xf32>
      %61 = vector.shape_cast %55 : vector<16x128xf32> to vector<1x16x128xf32>
      tpu.vector_store %arg15[%c0_47, %c0_48, %c0_49], %61 {strides = array<i32>} : memref<1x16x128xf32, #tpu.memory_space<vmem>>, vector<1x16x128xf32>,
      %c0_50 = arith.constant 0 : index
      %c0_51 = arith.constant 0 : index
      %c0_52 = arith.constant 0 : index
      %62 = vector.load %arg13[%c0_50, %c0_51, %c0_52] : memref<1x16x128xf32, #tpu.memory_space<vmem>>, vector<1x16x128xf32>
      %63 = vector.shape_cast %62 : vector<1x16x128xf32> to vector<16x128xf32>
      %cst_53 = arith.constant 5.000000e-01 : f32
      %64 = vector.broadcast %cst_53 : f32 to vector<16x128xf32>
      %65 = arith.mulf %64, %55 : vector<16x128xf32>
      %66 = math.exp %65 : vector<16x128xf32>
      %67 = arith.mulf %63, %66 : vector<16x128xf32>
      %68 = arith.addf %54, %67 : vector<16x128xf32>
      %69 = arith.truncf %68 : vector<16x128xf32> to vector<16x128xbf16>
      %c0_54 = arith.constant 0 : index
      %c0_55 = arith.constant 0 : index
      %c0_56 = arith.constant 0 : index
      %70 = vector.load %arg16[%c0_54, %c0_55, %c0_56] : memref<1x16x128xbf16, #tpu.memory_space<vmem>>, vector<1x16x128xbf16>
      %71 = vector.shape_cast %70 : vector<1x16x128xbf16> to vector<16x128xbf16>
      %72 = vector.shape_cast %69 : vector<16x128xbf16> to vector<1x16x128xbf16>
      tpu.vector_store %arg16[%c0_54, %c0_55, %c0_56], %72 {strides = array<i32>} : memref<1x16x128xbf16, #tpu.memory_space<vmem>>, vector<1x16x128xbf16>,
    } else {
    }
    return
  }
  func.func @transform_0(%arg0: i32, %arg1: i32) -> (i32, i32) {
    %c0_i32 = arith.constant 0 : i32
    %c0_i32_0 = arith.constant 0 : i32
    return %c0_i32, %arg1 : i32, i32
  }
  func.func @transform_1(%arg0: i32, %arg1: i32) -> (i32, i32, i32) {
    %c0_i32 = arith.constant 0 : i32
    %c0_i32_0 = arith.constant 0 : i32
    return %arg0, %arg1, %c0_i32 : i32, i32, i32
  }
  func.func @transform_2(%arg0: i32, %arg1: i32) -> (i32, i32, i32) {
    %c0_i32 = arith.constant 0 : i32
    %c0_i32_0 = arith.constant 0 : i32
    %c0_i32_1 = arith.constant 0 : i32
    return %arg0, %c0_i32, %c0_i32_0 : i32, i32, i32
  }
  func.func @transform_3(%arg0: i32, %arg1: i32) -> (i32, i32, i32) {
    %c0_i32 = arith.constant 0 : i32
    %c0_i32_0 = arith.constant 0 : i32
    %c0_i32_1 = arith.constant 0 : i32
    return %arg0, %c0_i32, %c0_i32_0 : i32, i32, i32
  }
  func.func @transform_4(%arg0: i32, %arg1: i32) -> (i32, i32, i32) {
    %c0_i32 = arith.constant 0 : i32
    %c0_i32_0 = arith.constant 0 : i32
    %c0_i32_1 = arith.constant 0 : i32
    return %arg0, %c0_i32, %c0_i32_0 : i32, i32, i32
  }
  func.func @transform_5(%arg0: i32, %arg1: i32) -> (i32, i32, i32) {
    %c0_i32 = arith.constant 0 : i32
    %c0_i32_0 = arith.constant 0 : i32
    %c0_i32_1 = arith.constant 0 : i32
    return %arg0, %c0_i32, %c0_i32_0 : i32, i32, i32
  }
  func.func @transform_6(%arg0: i32, %arg1: i32) -> (i32, i32, i32) {
    %c0_i32 = arith.constant 0 : i32
    %c0_i32_0 = arith.constant 0 : i32
    %c0_i32_1 = arith.constant 0 : i32
    return %arg0, %c0_i32, %c0_i32_0 : i32, i32, i32
  }
  func.func @transform_7(%arg0: i32, %arg1: i32) -> (i32, i32, i32) {
    %c0_i32 = arith.constant 0 : i32
    %c0_i32_0 = arith.constant 0 : i32
    %c0_i32_1 = arith.constant 0 : i32
    return %arg0, %c0_i32, %c0_i32_0 : i32, i32, i32
  }
  func.func @transform_8(%arg0: i32, %arg1: i32) -> (i32, i32, i32) {
    %c0_i32 = arith.constant 0 : i32
    %c0_i32_0 = arith.constant 0 : i32
    %c0_i32_1 = arith.constant 0 : i32
    return %arg0, %c0_i32, %c0_i32_0 : i32, i32, i32
  }
  func.func @transform_9(%arg0: i32, %arg1: i32) -> (i32, i32, i32) {
    %c0_i32 = arith.constant 0 : i32
    %c0_i32_0 = arith.constant 0 : i32
    %c0_i32_1 = arith.constant 0 : i32
    return %arg0, %c0_i32, %c0_i32_0 : i32, i32, i32
  }
  func.func @transform_10(%arg0: i32, %arg1: i32) -> (i32, i32, i32) {
    %c0_i32 = arith.constant 0 : i32
    %c0_i32_0 = arith.constant 0 : i32
    %c0_i32_1 = arith.constant 0 : i32
    return %arg0, %c0_i32, %c0_i32_0 : i32, i32, i32
  }
  func.func @transform_11(%arg0: i32, %arg1: i32) -> (i32, i32, i32) {
    %c0_i32 = arith.constant 0 : i32
    %c0_i32_0 = arith.constant 0 : i32
    %c0_i32_1 = arith.constant 0 : i32
    return %arg0, %c0_i32, %c0_i32_0 : i32, i32, i32
  }
  func.func @transform_12(%arg0: i32, %arg1: i32) -> (i32, i32, i32) {
    %c0_i32 = arith.constant 0 : i32
    %c0_i32_0 = arith.constant 0 : i32
    %c0_i32_1 = arith.constant 0 : i32
    return %arg0, %c0_i32, %c0_i32_0 : i32, i32, i32
  }
  func.func @transform_13(%arg0: i32, %arg1: i32) -> (i32, i32, i32) {
    %c0_i32 = arith.constant 0 : i32
    %c0_i32_0 = arith.constant 0 : i32
    %c0_i32_1 = arith.constant 0 : i32
    return %arg0, %c0_i32, %c0_i32_0 : i32, i32, i32
  }
  func.func @transform_14(%arg0: i32, %arg1: i32) -> (i32, i32, i32) {
    %c0_i32 = arith.constant 0 : i32
    %c0_i32_0 = arith.constant 0 : i32
    %c0_i32_1 = arith.constant 0 : i32
    return %arg0, %c0_i32, %c0_i32_0 : i32, i32, i32
  }
}

</mosaic_0001>

<bundles_post_ra>
// kernel: tpu_custom_call.1
= control target key start
LH: loop header
LB: loop body
LE: loop exit
PB: predicated region body
PF: predicated region fallthrough
CT: control target
= control target key end

     0   :  { %s3073_s0 = inlined_call_operand.hbm [shape: bf16[16,128], index: 0, kind: input, shape index: {}]   ;;  %s3074_s1 = inlined_call_operand.hbm [shape: bf16[2,128,128], index: 1, kind: input, shape index: {}]   ;;  %s3075_s2 = inlined_call_operand.vmem [shape: f32[2,1,128], index: 2, kind: input, shape index: {}]   ;;  %s3076_s3 = inlined_call_operand.vmem [shape: f32[2,1,128], index: 3, kind: input, shape index: {}]   ;;  %s3077_s4 = inlined_call_operand.hbm [shape: f32[2,1,128], index: 4, kind: input, shape index: {}]   ;;  %s3078_s5 = inlined_call_operand.hbm [shape: bf16[2,128,128], index: 5, kind: input, shape index: {}]   ;;  %s3079_s6 = inlined_call_operand.hbm [shape: f32[2,1,128], index: 6, kind: input, shape index: {}]   ;;  %s3080_s7 = inlined_call_operand.hbm [shape: f32[2,1,128], index: 7, kind: input, shape index: {}]   ;;  %s3081_s8 = inlined_call_operand.hbm [shape: f32[2,1,128], index: 8, kind: input, shape index: {}]   ;;  %s3082_s9 = inlined_call_operand.hbm [shape: bf16[2,128,256], index: 9, kind: input, shape index: {}]   ;;  %s3083_s10 = inlined_call_operand.vmem [shape: f32[2,1,256], index: 10, kind: input, shape index: {}]   ;;  %s3084_s11 = inlined_call_operand.vmem [shape: f32[2,16,128], index: 11, kind: input, shape index: {}]   ;;  %s3085_s12 = inlined_call_operand.hbm [shape: f32[2,16,128], index: 12, kind: output, shape index: {0}]   ;;  %s3086_s13 = inlined_call_operand.hbm [shape: f32[2,16,128], index: 13, kind: output, shape index: {1}]   ;;  %s3087_s14 = inlined_call_operand.hbm [shape: bf16[2,16,128], index: 14, kind: output, shape index: {2}]  }
   0x1   :  { %3114 = sst [smem:[#allocation32_spill]] %s3074_s1 }
   0x2   :  { %3115 = sst [smem:[#allocation33_spill]] %s3075_s2 }
   0x3   :  { %3116 = sst [smem:[#allocation34_spill]] %s3076_s3 }
   0x4   :  { %3117 = sst [smem:[#allocation35_spill]] %s3077_s4 }
   0x5   :  { %3118 = sst [smem:[#allocation36_spill]] %s3078_s5 }
   0x6   :  { %3119 = sst [smem:[#allocation37_spill]] %s3080_s7 }
   0x7   :  { %3120 = sst [smem:[#allocation38_spill]] %s3081_s8 }
   0x8   :  { %3121 = sst [smem:[#allocation39_spill]] %s3082_s9 }
   0x9   :  { %3122 = sst [smem:[#allocation40_spill]] %s3083_s10 }
   0xa   :  { %3123 = sst [smem:[#allocation41_spill]] %s3084_s11 }
   0xb   :  { %3124 = sst [smem:[#allocation42_spill]] %s3085_s12 }
   0xc   :  { %3125 = sst [smem:[#allocation43_spill]] %s3086_s13 }
   0xd   :  { %3126 = sst [smem:[#allocation44_spill]] %s3087_s14 }
   0xe   :  { %20 = vsyncpa [#allocation4], 0 }
   0xf   :  { %21 = vsyncpa [#allocation7], 0 }
  0x10   :  { %23 = vsyncpa [#allocation7 + $0x1], 0 }
  0x11   :  { %24 = vsyncpa [#allocation10], 0 }
  0x12   :  { %26 = vsyncpa [#allocation10 + $0x1], 0 }
  0x13   :  { %27 = vsyncpa [#allocation13], 0 }
  0x14   :  { %29 = vsyncpa [#allocation13 + $0x1], 0 }
  0x15   :  { %30 = vsyncpa [#allocation16], 0 }
  0x16   :  { %32 = vsyncpa [#allocation16 + $0x1], 0 }
  0x17   :  { %33 = vsyncpa [#allocation5], 0 }
  0x18   :  { %35 = vsyncpa [#allocation5 + $0x1], 0 }
  0x19   :  { %36 = vsyncpa [#allocation19], 0 }
  0x1a   :  { %38 = vsyncpa [#allocation19 + $0x1], 0  ;;  %s2477_s29 = smov 0   ;;  %s2479_s30 = smov 0  }
  0x1b   :  { %s2481_s15 = smov 0   ;;  %s2483_s16 = smov 0  }
  0x1c   :  { %s2485_s17 = smov 0   ;;  %s2487_s18 = smov 0  }
  0x1d LB: > { %3127 = sst [smem:[#allocation28_spill]] %s2366_s15  ;;  %s56_s19 = sadd.s32 1, %s2374_s17  ;;  %s2378_s18 = sphi %s2487_s18, %s44_s18   ;;  %s2374_s17 = sphi %s2485_s17, %s3179_s17   ;;  %s2370_s16 = sphi %s2483_s16, %s3178_s16   ;;  %s2366_s15 = sphi %s2481_s15, %s3174_s15   ;;  %s2362_s30 = sphi %s2479_s30, %s3177_s30   ;;  %s2358_s29 = sphi %s2477_s29, %s3176_s29  }
  0x1e   : > { %3128 = sst [smem:[#allocation29_spill]] %s2370_s16  ;;  %s91_s20 = sadd.s32 1, %s2366_s15 }
  0x1f   : > { %p58_p0 = scmp.ge.s32.totalorder %s56_s19, 2  ;;  %p3093_p1 = scmp.ne.s32.totalorder %s2366_s15, %s2362_s30 }
  0x20   : > { %p99_p2 = scmp.eq.s32.totalorder %s2378_s18, 0  ;;  %p1874_p6 = scmp.lt.s32.totalorder %s2378_s18, 2 }
  0x21   : > { %s3181_s19 = smov (%p58_p0, %s56_s19), 0  ;;  %s2526_s23 = sand.u32 1, %s2378_s18  }
  0x22   : > { %3129 = sst [smem:[#allocation30_spill]] %s3181_s19  ;;  %p2517_p3 = por %p99_p2, %p3093_p1 }
  0x23   : > { %s86_s22 = ssub.s32 %s2374_s17, %s3181_s19  ;;  %s2529_s24 = sand.u32 1, %s2366_s15  }
  0x24   : > { %p89_p5 = scmp.eq.s32.totalorder %s86_s22, 0  ;;  %s3092_s26 = sshll.u32 %s2529_s24, 6 }
  0x25   : > { %s1741_s27 = sshll.u32 %s2374_s17, 10  ;;  %s3132_s1 = sld [smem:[#allocation32_spill]] }
  0x26   : > { %s2532_s25 = scalar_select %p89_p5, %s2366_s15, %s91_s20  }
  0x27   : > { %s485_s22 = scalar_lea.vmem [#allocation6], %s3092_s26  ;;  %p2547_p7 = pnand %p1874_p6, %p2517_p3 }
  0x28   : > { %3131 = sst [smem:[#allocation31_spill]] %s2532_s25  ;;  %s494_s19 = sshll.u32 %s485_s22, 4  ;;  %s2543_s19 = int_to_ptr.vmem [resolvable:$true] %s494_s19 }
  0x29   : > { %s3133_s20 = scalar_select %p2547_p7, 1, 0 }
  0x2a   : > { %s3134_s5 = sld [smem:[#allocation36_spill]]  ;;  %s3104_s28 = scalar_lea.sflag [#allocation7], %s2526_s23 }
  0x2b   : > { %s2539_s11 = scalar_lea.hbm %s3132_s1, %s1741_s27  ;;  %p2561_p9 = pneg %p2547_p7 }
  0x2c   : > { %s1982_s12 = scalar_lea.hbm %s2539_s11, 1024  ;;  %s1987_s10 = scalar_lea.hbm %s3132_s1, 2048 }
  0x2d   : > { %p1983_p8 = scmp.ne.s32.totalorder %s2539_s11, %s1982_s12  ;;  %p1988_p12 = scmp.lt.u32.totalorder %s2539_s11, %s3132_s1 }
  0x2e   : > { %s3135_s26 = scalar_select %p2561_p9, 1, 0 }
  0x2f   : > { %p1985_p10 = pnand %p2561_p9, %p1983_p8  ;;  %p1989_p13 = scmp.lt.u32.totalorder %s1987_s10, %s1982_s12 }
  0x30   : > { %s2554_s14 = scalar_lea.hbm %s3134_s5, %s1741_s27  ;;  %p1991_p2 = scmp.lt.u32.totalorder %s1982_s12, %s2539_s11 }
  0x31   : > { %p1986_p11 = pneg %p1985_p10  ;;  %p1990_p0 = por %p1989_p13, %p1988_p12 }
  0x33   : > { %p1992_p3 = por %p1991_p2, %p1990_p0 }
  0x35   : > { %p1993_p5 = pnand %p1992_p3, %p1986_p11 }
  0x37   : > { %1996 = shalt.err (!%p1993_p5)
}
  0x38   : > { %s1997_s27 = scalar_lea.vmem %s2543_s19, 1024  ;;  %s2380_s21 = smov [#allocation6]  }
  0x39   : > { %p1998_p6 = scmp.ne.s32.totalorder %s2543_s19, %s1997_s27  ;;  %s2002_s22 = sshll.u32 %s2380_s21, 4  ;;  %s2003_s22 = int_to_ptr.vmem [resolvable:$false] %s2002_s22 }
  0x3a   : > { %s2004_s13 = scalar_lea.vmem %s2003_s22, 2048  ;;  %p2005_p4 = scmp.lt.s32.totalorder %s2543_s19, %s2003_s22 }
  0x3b   : > { %p2000_p8 = pnand %p1998_p6, %p2561_p9  ;;  %p2006_p1 = scmp.lt.s32.totalorder %s2004_s13, %s1997_s27 }
  0x3d   : > { %p2001_p10 = pneg %p2000_p8  ;;  %p2007_p12 = por %p2006_p1, %p2005_p4 }
  0x3f   : > { %p2008_p13 = pnand %p2007_p12, %p2001_p10 }
  0x41   : > { %2011 = shalt.err (!%p2008_p13)
}
  0x42   : > { %s3102_s10 = smov 64   ;;  %s3103_s12 = smov 4  }
  0x43   : > { %1844 = dma.hbm_to_vmem [thread:$0]  (!%p2547_p7), %s2539_s11, 1024, %s2543_s19, %s3104_s28, %s3102_s10, %s3102_s10, %s3103_s12  }
  0x44   : > { %s3136_s25 = sshll.u32 %s2529_s24, 6  ;;  %s2592_s22 = sshll.u32 %s2374_s17, 4 }
  0x45   : > { %s537_s27 = scalar_lea.vmem [#allocation9], %s3136_s25  ;;  %s3101_s13 = scalar_lea.sflag [#allocation10], %s2526_s23 }
  0x46   : > { %s544_s21 = sshll.u32 %s537_s27, 4  ;;  %s2012_s1 = scalar_lea.hbm %s2554_s14, 1024  ;;  %s2594_s21 = int_to_ptr.vmem [resolvable:$true] %s544_s21 }
  0x47   : > { %p2013_p1 = scmp.ne.s32.totalorder %s2554_s14, %s2012_s1  ;;  %s2017_s16 = scalar_lea.hbm %s3134_s5, 2048 }
  0x48   : > { %p2018_p0 = scmp.lt.u32.totalorder %s2554_s14, %s3134_s5  ;;  %p2019_p2 = scmp.lt.u32.totalorder %s2017_s16, %s2012_s1 }
  0x49   : > { %p2015_p4 = pnand %p2013_p1, %p2561_p9  ;;  %p2021_p5 = scmp.lt.u32.totalorder %s2012_s1, %s2554_s14 }
  0x4a   : > { %p2020_p3 = por %p2019_p2, %p2018_p0 }
  0x4b   : > { %p2016_p11 = pneg %p2015_p4 }
  0x4c   : > { %p2022_p6 = por %p2021_p5, %p2020_p3 }
  0x4e   : > { %p2023_p8 = pnand %p2022_p6, %p2016_p11 }
  0x50   : > { %2026 = shalt.err (!%p2023_p8)
}
  0x51   : > { %s2027_s11 = scalar_lea.vmem %s2594_s21, 1024  ;;  %s2383_s2 = smov [#allocation9]  }
  0x52   : > { %p2028_p10 = scmp.ne.s32.totalorder %s2594_s21, %s2027_s11  ;;  %s2032_s3 = sshll.u32 %s2383_s2, 4  ;;  %s2033_s3 = int_to_ptr.vmem [resolvable:$false] %s2032_s3 }
  0x53   : > { %s2034_s8 = scalar_lea.vmem %s2033_s3, 2048  ;;  %p2035_p1 = scmp.lt.s32.totalorder %s2594_s21, %s2033_s3 }
  0x54   : > { %p2030_p12 = pnand %p2028_p10, %p2561_p9  ;;  %p2036_p4 = scmp.lt.s32.totalorder %s2034_s8, %s2027_s11 }
  0x56   : > { %p2031_p13 = pneg %p2030_p12  ;;  %p2037_p0 = por %p2036_p4, %p2035_p1 }
  0x58   : > { %p2038_p2 = pnand %p2037_p0, %p2031_p13 }
  0x5a   : > { %2041 = shalt.err (!%p2038_p2)
}
  0x5b   : > { %1850 = dma.hbm_to_vmem [thread:$0]  (!%p2547_p7), %s2554_s14, 1024, %s2594_s21, %s3101_s13, %s3102_s10, %s3102_s10, %s3103_s12  }
  0x5c   : > { %s3137_s7 = sld [smem:[#allocation37_spill]]  ;;  %s574_s19 = scalar_lea.vmem [#allocation12], %s2529_s24 }
  0x5d   : > { %s581_s25 = sshll.u32 %s574_s19, 4  ;;  %s3100_s27 = scalar_lea.sflag [#allocation13], %s2526_s23  ;;  %s582_s25 = int_to_ptr.vmem [resolvable:$true] %s581_s25 }
  0x62   : > { %s2627_s16 = scalar_lea.hbm %s3137_s7, %s2592_s22  ;;  %s2047_s21 = scalar_lea.hbm %s3137_s7, 32 }
  0x63   : > { %s2042_s11 = scalar_lea.hbm %s2627_s16, 16  ;;  %p2048_p6 = scmp.lt.u32.totalorder %s2627_s16, %s3137_s7 }
  0x64   : > { %p2043_p11 = scmp.ne.s32.totalorder %s2627_s16, %s2042_s11  ;;  %p2049_p8 = scmp.lt.u32.totalorder %s2047_s21, %s2042_s11 }
  0x65   : > { %p2051_p12 = scmp.lt.u32.totalorder %s2042_s11, %s2627_s16 }
  0x66   : > { %p2045_p3 = pnand %p2043_p11, %p2561_p9  ;;  %p2050_p10 = por %p2049_p8, %p2048_p6 }
  0x68   : > { %p2046_p5 = pneg %p2045_p3  ;;  %p2052_p13 = por %p2051_p12, %p2050_p10 }
  0x6a   : > { %p2053_p1 = pnand %p2052_p13, %p2046_p5 }
  0x6c   : > { %2056 = shalt.err (!%p2053_p1)
}
  0x6d   : > { %s2057_s1 = scalar_lea.vmem %s582_s25, 16  ;;  %s2384_s9 = smov [#allocation12]  }
  0x6e   : > { %p2058_p4 = scmp.ne.s32.totalorder %s582_s25, %s2057_s1  ;;  %s2062_s19 = sshll.u32 %s2384_s9, 4  ;;  %s2063_s19 = int_to_ptr.vmem [resolvable:$false] %s2062_s19 }
  0x6f   : > { %s2064_s2 = scalar_lea.vmem %s2063_s19, 32  ;;  %p2065_p11 = scmp.lt.s32.totalorder %s582_s25, %s2063_s19 }
  0x70   : > { %p2060_p0 = pnand %p2058_p4, %p2561_p9  ;;  %p2066_p3 = scmp.lt.s32.totalorder %s2064_s2, %s2057_s1 }
  0x72   : > { %p2061_p2 = pneg %p2060_p0  ;;  %p2067_p7 = por %p2066_p3, %p2065_p11 }
  0x74   : > { %p2068_p6 = pnand %p2067_p7, %p2061_p2 }
  0x76   : > { %2071 = shalt.err (!%p2068_p6)
}
  0x77   : > { %p3138_p8 = scmp.ne.s32.totalorder %s3133_s20, 0  ;;  %s2651_s11 = sadd.s32 4294967295, %s2378_s18  }
  0x78   : > { %s3099_s14 = sadd.s32 4294967294, %s2378_s18   ;;  %p104_p7 = scmp.ne.s32.totalorder %s2362_s30, %s2358_s29 }
  0x79   : > { %1856 = dma.hbm_to_vmem [thread:$0]  (!%p3138_p8), %s2627_s16, 16, %s582_s25, %s3100_s27  }
  0x7a   : > { %p3105_p5 = scmp.eq.s32.totalorder %s2651_s11, 0  ;;  %p388_p10 = scmp.eq.s32.totalorder %s2651_s11, 1 }
  0x7b   : > { %p394_p12 = scmp.eq.s32.totalorder %s3099_s14, 1  ;;  %p1662_p1 = scmp.ge.s32.totalorder %s2378_s18, 1 }
  0x7c   : > { %p2662_p13 = por %p3105_p5, %p104_p7  ;;  %p3140_p4 = scmp.ne.s32.totalorder %s2366_s15, %s2362_s30 }
  0x7d   : > { %p2674_p2 = por %p394_p12, %p104_p7  ;;  %p453_p11 = scmp.lt.s32.totalorder %s2378_s18, 3 }
  0x7e   : > { %s3139_s21 = scalar_select %p2662_p13, 1, 0 }
  0x7f   : > { %p2670_p0 = por %p388_p10, %p3140_p4  ;;  %p2679_p3 = pnand %p1662_p1, %p453_p11 }
  0x80   : > { %s3142_s25 = scalar_select %p2674_p2, 1, 0 }
  0x81   : > { %s3141_s16 = scalar_select %p2670_p0, 1, 0 }
  0x82   : > { %s3143_s3 = scalar_select %p2679_p3, 1, 0 }
  0x83   : > { %s2385_s8 = smov [#allocation3]   ;;  %s3144_s4 = sld [smem:[#allocation35_spill]] }
  0x84   : > { %s467_s1 = sshll.u32 %s2385_s8, 4  ;;  %p1837_p6 = pneg %p2679_p3  ;;  %s2683_s1 = int_to_ptr.vmem [resolvable:$true] %s467_s1 }
  0x85   : > { %s519_s14 = scalar_lea.vmem [#allocation8], %s2529_s24  ;;  %s2706_s9 = scalar_lea.hbm %s3079_s6, %s2592_s22 }
  0x86   : > { %s526_s27 = sshll.u32 %s519_s14, 4  ;;  %p2698_p7 = pnand %p1837_p6, %p3105_p5  ;;  %s2694_s27 = int_to_ptr.vmem [resolvable:$true] %s526_s27 }
  0x88   : > { %s3145_s8 = scalar_select %p2698_p7, 1, 0 }
  0x89   : > { %s2689_s2 = scalar_lea.hbm %s3144_s4, %s2592_s22  ;;  %s2077_s14 = scalar_lea.hbm %s3144_s4, 32 }
  0x8a   : > { %s2072_s19 = scalar_lea.hbm %s2689_s2, 16  ;;  %p2078_p4 = scmp.lt.u32.totalorder %s2689_s2, %s3144_s4 }
  0x8b   : > { %p2073_p10 = scmp.ne.s32.totalorder %s2689_s2, %s2072_s19  ;;  %p2079_p11 = scmp.lt.u32.totalorder %s2077_s14, %s2072_s19 }
  0x8c   : > { %p2081_p5 = scmp.lt.u32.totalorder %s2072_s19, %s2689_s2 }
  0x8d   : > { %p2075_p12 = pnand %p2073_p10, %p2561_p9  ;;  %p2080_p6 = por %p2079_p11, %p2078_p4 }
  0x8f   : > { %p2076_p1 = pneg %p2075_p12  ;;  %p2082_p2 = por %p2081_p5, %p2080_p6 }
  0x91   : > { %p2083_p0 = pnand %p2082_p2, %p2076_p1 }
  0x93   : > { %2086 = shalt.err (!%p2083_p0)
}
  0x94   : > { %s2087_s10 = scalar_lea.vmem %s2694_s27, 16  ;;  %s2386_s28 = smov [#allocation8]  }
  0x95   : > { %p2088_p10 = scmp.ne.s32.totalorder %s2694_s27, %s2087_s10  ;;  %s2092_s12 = sshll.u32 %s2386_s28, 4  ;;  %s2093_s12 = int_to_ptr.vmem [resolvable:$false] %s2092_s12 }
  0x96   : > { %s2094_s5 = scalar_lea.vmem %s2093_s12, 32  ;;  %p2095_p3 = scmp.lt.s32.totalorder %s2694_s27, %s2093_s12 }
  0x97   : > { %p2090_p12 = pnand %p2088_p10, %p2561_p9  ;;  %p2096_p7 = scmp.lt.s32.totalorder %s2094_s5, %s2087_s10 }
  0x99   : > { %p2091_p13 = pneg %p2090_p12  ;;  %p2097_p4 = por %p2096_p7, %p2095_p3 }
  0x9b   : > { %p2098_p11 = pnand %p2097_p4, %p2091_p13 }
  0x9d   : > { %2101 = shalt.err (!%p2098_p11)
}
  0x9e   : > { %s3146_s7 = scalar_lea.sflag [#allocation7], %s2526_s23  ;;  %s557_s13 = scalar_lea.vmem [#allocation11], %s2529_s24 }
  0x9f   : > { %1847 = dma.hbm_to_vmem [thread:$0]  (!%p3138_p8), %s2689_s2, 16, %s2694_s27, %s3146_s7  }
  0xa0   : > { %s564_s19 = sshll.u32 %s557_s13, 4  ;;  %s2102_s4 = scalar_lea.hbm %s3073_s0, 128  ;;  %s565_s19 = int_to_ptr.vmem [resolvable:$true] %s564_s19 }
  0xa1   : > { %p2103_p5 = scmp.ne.s32.totalorder %s3073_s0, %s2102_s4  ;;  %p3147_p13 = scmp.ne.s32.totalorder %s3145_s8, 0 }
  0xa2   : > { %p2109_p7 = scmp.lt.u32.totalorder %s2102_s4, %s3073_s0 }
  0xa3   : > { %p2104_p0 = pneg %p3147_p13 }
  0xa5   : > { %p2105_p2 = pnand %p2104_p0, %p2103_p5 }
  0xa7   : > { %p2106_p3 = pneg %p2105_p2 }
  0xa9   : > { %p2111_p1 = pnand %p2109_p7, %p2106_p3 }
  0xab   : > { %2114 = shalt.err (!%p2111_p1)
}
  0xac   : > { %s2115_s27 = scalar_lea.vmem %s2683_s1, 128  ;;  %p2123_p4 = scmp.lt.s32.totalorder %s2683_s1, %s2683_s1 }
  0xad   : > { %p2116_p6 = scmp.ne.s32.totalorder %s2683_s1, %s2115_s27  ;;  %p2124_p11 = scmp.lt.s32.totalorder %s2115_s27, %s2115_s27 }
  0xaf   : > { %p2118_p10 = pnand %p2116_p6, %p2104_p0  ;;  %p2125_p8 = por %p2124_p11, %p2123_p4 }
  0xb1   : > { %p2119_p12 = pneg %p2118_p10 }
  0xb3   : > { %p2126_p9 = pnand %p2125_p8, %p2119_p12 }
  0xb5   : > { %2129 = shalt.err (!%p2126_p9)
}
  0xb6   : > { %s3148_s2 = smov 4   ;;  %s3149_s15 = smov 64  }
  0xb7   : > { %1840 = dma.hbm_to_vmem [thread:$0]  (!%p3147_p13), %s3073_s0, 128, %s2683_s1, [#allocation4], %s3149_s15, %s3149_s15, %s3148_s2  }
  0xb8   : > { %s2130_s13 = scalar_lea.hbm %s2706_s9, 16  ;;  %p3150_p8 = scmp.ne.s32.totalorder %s3135_s26, 0 }
  0xb9   : > { %p2131_p5 = scmp.ne.s32.totalorder %s2706_s9, %s2130_s13  ;;  %s2135_s28 = scalar_lea.hbm %s3079_s6, 32 }
  0xba   : > { %p2136_p2 = scmp.lt.u32.totalorder %s2706_s9, %s3079_s6  ;;  %p2137_p3 = scmp.lt.u32.totalorder %s2135_s28, %s2130_s13 }
  0xbb   : > { %p2133_p9 = pnand %p2131_p5, %p3150_p8  ;;  %p2139_p1 = scmp.lt.u32.totalorder %s2130_s13, %s2706_s9 }
  0xbc   : > { %p2138_p7 = por %p2137_p3, %p2136_p2 }
  0xbd   : > { %p2134_p0 = pneg %p2133_p9 }
  0xbe   : > { %p2140_p6 = por %p2139_p1, %p2138_p7 }
  0xc0   : > { %p2141_p10 = pnand %p2140_p6, %p2134_p0 }
  0xc2   : > { %2144 = shalt.err (!%p2141_p10)
}
  0xc3   : > { %s2145_s1 = scalar_lea.vmem %s565_s19, 16  ;;  %s2387_s5 = smov [#allocation11]  }
  0xc4   : > { %p2146_p13 = scmp.ne.s32.totalorder %s565_s19, %s2145_s1  ;;  %s2150_s27 = sshll.u32 %s2387_s5, 4  ;;  %s2151_s27 = int_to_ptr.vmem [resolvable:$false] %s2150_s27 }
  0xc5   : > { %s2152_s2 = scalar_lea.vmem %s2151_s27, 32  ;;  %p2153_p11 = scmp.lt.s32.totalorder %s565_s19, %s2151_s27 }
  0xc6   : > { %p2148_p12 = pnand %p2146_p13, %p3150_p8  ;;  %p2154_p5 = scmp.lt.s32.totalorder %s2152_s2, %s2145_s1 }
  0xc8   : > { %p2149_p4 = pneg %p2148_p12  ;;  %p2155_p9 = por %p2154_p5, %p2153_p11 }
  0xca   : > { %p2156_p2 = pnand %p2155_p9, %p2149_p4 }
  0xcc   : > { %2159 = shalt.err (!%p2156_p2)
}
  0xcd   : > { %p3151_p3 = scmp.ne.s32.totalorder %s3133_s20, 0  ;;  %s3152_s15 = scalar_lea.sflag [#allocation10], %s2526_s23 }
  0xce   : > { %s3153_s13 = sld [smem:[#allocation38_spill]]  ;;  %s591_s14 = scalar_lea.vmem [#allocation14], %s2529_s24 }
  0xcf   : > { %1853 = dma.hbm_to_vmem [thread:$0]  (!%p3151_p3), %s2706_s9, 16, %s565_s19, %s3152_s15  }
  0xd0   : > { %s598_s28 = sshll.u32 %s591_s14, 4  ;;  %s599_s28 = int_to_ptr.vmem [resolvable:$true] %s598_s28 }
  0xd4   : > { %s2779_s8 = scalar_lea.hbm %s3153_s13, %s2592_s22  ;;  %s2165_s9 = scalar_lea.hbm %s3153_s13, 32 }
  0xd5   : > { %s2160_s12 = scalar_lea.hbm %s2779_s8, 16  ;;  %p2166_p6 = scmp.lt.u32.totalorder %s2779_s8, %s3153_s13 }
  0xd6   : > { %p2161_p0 = scmp.ne.s32.totalorder %s2779_s8, %s2160_s12  ;;  %p2167_p10 = scmp.lt.u32.totalorder %s2165_s9, %s2160_s12 }
  0xd7   : > { %p2169_p12 = scmp.lt.u32.totalorder %s2160_s12, %s2779_s8 }
  0xd8   : > { %p2163_p7 = pnand %p2161_p0, %p3150_p8  ;;  %p2168_p13 = por %p2167_p10, %p2166_p6 }
  0xda   : > { %p2164_p1 = pneg %p2163_p7  ;;  %p2170_p4 = por %p2169_p12, %p2168_p13 }
  0xdc   : > { %p2171_p11 = pnand %p2170_p4, %p2164_p1 }
  0xde   : > { %2174 = shalt.err (!%p2171_p11)
}
  0xdf   : > { %s2175_s22 = scalar_lea.vmem %s599_s28, 16  ;;  %s2388_s27 = smov [#allocation14]  }
  0xe0   : > { %p2176_p5 = scmp.ne.s32.totalorder %s599_s28, %s2175_s22  ;;  %s2180_s2 = sshll.u32 %s2388_s27, 4  ;;  %s2181_s2 = int_to_ptr.vmem [resolvable:$false] %s2180_s2 }
  0xe1   : > { %s2182_s15 = scalar_lea.vmem %s2181_s2, 32  ;;  %p2183_p0 = scmp.lt.s32.totalorder %s599_s28, %s2181_s2 }
  0xe2   : > { %p2178_p9 = pnand %p2176_p5, %p3150_p8  ;;  %p2184_p7 = scmp.lt.s32.totalorder %s2182_s15, %s2175_s22 }
  0xe4   : > { %p2179_p2 = pneg %p2178_p9  ;;  %p2185_p3 = por %p2184_p7, %p2183_p0 }
  0xe6   : > { %p2186_p6 = pnand %p2185_p3, %p2179_p2 }
  0xe8   : > { %2189 = shalt.err (!%p2186_p6)
}
  0xe9   : > { %p3154_p10 = scmp.ne.s32.totalorder %s3133_s20, 0  ;;  %s3155_s4 = scalar_lea.sflag [#allocation13], %s2526_s23 }
  0xea   : > { %s1675_s7 = sshll.u32 %s2529_s24, 7  ;;  %s1743_s14 = sshll.u32 %s2374_s17, 11 }
  0xeb   : > { %1859 = dma.hbm_to_vmem [thread:$0]  (!%p3154_p10), %s2779_s8, 16, %s599_s28, %s3155_s4  }
  0xec   : > { %s3156_s1 = sld [smem:[#allocation39_spill]]  ;;  %s609_s19 = scalar_lea.vmem [#allocation15], %s1675_s7 }
  0xed   : > { %s616_s5 = sshll.u32 %s609_s19, 4  ;;  %s606_s23 = scalar_lea.sflag [#allocation16], %s2529_s24  ;;  %s2808_s5 = int_to_ptr.vmem [resolvable:$true] %s616_s5 }
  0xf2   : > { %s2806_s9 = scalar_lea.hbm %s3156_s1, %s1743_s14  ;;  %s2195_s27 = scalar_lea.hbm %s3156_s1, 4096 }
  0xf3   : > { %s2190_s22 = scalar_lea.hbm %s2806_s9, 2048  ;;  %p2196_p12 = scmp.lt.u32.totalorder %s2806_s9, %s3156_s1 }
  0xf4   : > { %p2191_p3 = scmp.ne.s32.totalorder %s2806_s9, %s2190_s22  ;;  %p2197_p4 = scmp.lt.u32.totalorder %s2195_s27, %s2190_s22 }
  0xf5   : > { %p2199_p5 = scmp.lt.u32.totalorder %s2190_s22, %s2806_s9 }
  0xf6   : > { %p2193_p1 = pnand %p2191_p3, %p3150_p8  ;;  %p2198_p11 = por %p2197_p4, %p2196_p12 }
  0xf8   : > { %p2194_p13 = pneg %p2193_p1  ;;  %p2200_p9 = por %p2199_p5, %p2198_p11 }
  0xfa   : > { %p2201_p2 = pnand %p2200_p9, %p2194_p13 }
  0xfc   : > { %2204 = shalt.err (!%p2201_p2)
}
  0xfd   : > { %s2205_s4 = scalar_lea.vmem %s2808_s5, 2048  ;;  %s2389_s7 = smov [#allocation15]  }
  0xfe   : > { %p2206_p0 = scmp.ne.s32.totalorder %s2808_s5, %s2205_s4  ;;  %s2210_s14 = sshll.u32 %s2389_s7, 4  ;;  %s2211_s14 = int_to_ptr.vmem [resolvable:$false] %s2210_s14 }
  0xff   : > { %s2212_s12 = scalar_lea.vmem %s2211_s14, 4096  ;;  %p2213_p3 = scmp.lt.s32.totalorder %s2808_s5, %s2211_s14 }
 0x100   : > { %p2208_p7 = pnand %p2206_p0, %p3150_p8  ;;  %p2214_p1 = scmp.lt.s32.totalorder %s2212_s12, %s2205_s4 }
 0x102   : > { %p2209_p6 = pneg %p2208_p7  ;;  %p2215_p12 = por %p2214_p1, %p2213_p3 }
 0x104   : > { %p2216_p4 = pnand %p2215_p12, %p2209_p6 }
 0x106   : > { %2219 = shalt.err (!%p2216_p4)
}
 0x107   : > { %s2390_s10 = smov 128   ;;  %s2391_s19 = smov 8  }
 0x108   : > { %1862 = dma.hbm_to_vmem [thread:$0]  (!%p3154_p10), %s2806_s9, 2048, %s2808_s5, %s606_s23, %s2390_s10, %s2390_s10, %s2391_s19  }
 0x109   : > { %p3157_p8 = scmp.ne.s32.totalorder %s3143_s3, 0 }
 0x10a   : > { %p3158_p13 = scmp.eq.s32.totalorder (!%p3157_p8), %s2651_s11, 0 }
 0x10b   : > { %643 = sbr.rel (%p3157_p8) target bundleno = 1059 (0x423), region = 68 }
 0x112   : > { %2329 = dma.done.wait (%p3158_p13), [#allocation4], 128   ;;  %p3159_p11 = pmov %p3158_p13 }
 0x113   : > { %s2841_s26 = sand.u32 1, %s2651_s11   ;;  %s2844_s22 = sand.u32 1, %s2362_s30  }
 0x114   : > { %2331 = vsyncadd (%p3159_p11), [#allocation4], 4294967168  ;;  %s1680_s24 = sshll.u32 %s2844_s22, 6  ;;  %s650_s20 = scalar_lea.sflag [#allocation7], %s2841_s26 }
 0x115   : > { %s2848_s9 = scalar_lea.vmem [#allocation6], %s1680_s24  ;;  %p3160_p10 = scmp.ne.s32.totalorder %s3139_s21, 0 }
 0x117   : > { %2333 = dma.done.wait (%p3160_p10), %s650_s20, 1040  }
 0x118   : > { %2335 = vsyncadd (%p3160_p10), %s650_s20, 4294966256  ;;  %s661_s3 = scalar_lea.vmem [#allocation8], %s2844_s22  ;;  %s667_s5 = scalar_lea.sflag [#allocation10], %s2841_s26 }
 0x119   : > { %s2856_s11 = scalar_lea.vmem [#allocation9], %s1680_s24 }
 0x11a   : > { %2337 = dma.done.wait (%p3160_p10), %s667_s5, 1040  }
 0x11b   : > { %2339 = vsyncadd (%p3160_p10), %s667_s5, 4294966256  ;;  %s678_s23 = scalar_lea.vmem [#allocation11], %s2844_s22  ;;  %s684_s8 = scalar_lea.sflag [#allocation13], %s2841_s26 }
 0x11c   : > { %s686_s28 = scalar_lea.vmem [#allocation12], %s2844_s22 }
 0x11d   : > { %2341 = dma.done.wait (%p3160_p10), %s684_s8, 32  }
 0x11e   : > { %2343 = vsyncadd (%p3160_p10), %s684_s8, 4294967264  ;;  %s1682_s27 = sshll.u32 %s2844_s22, 7  ;;  %s694_s2 = scalar_lea.vmem [#allocation14], %s2844_s22 }
 0x11f   : > { %s700_s15 = scalar_lea.sflag [#allocation16], %s2844_s22  ;;  %s2872_s4 = scalar_lea.vmem [#allocation15], %s1682_s27 }
 0x120   : > { %2345 = dma.done.wait (%p3160_p10), %s700_s15, 2048  }
 0x121   : > { %2347 = vsyncadd (%p3160_p10), %s700_s15, 4294965248  ;;  %v2392_v0 = vmov 0.0   ;;  %vm2393_vm0 = vmmov 0   ;;  %v1937_v1 = vld [vmem:[%s2848_s9] sm:$0xff]   ;;  %v1938_v2 = vld [vmem:[%s2848_s9 + $0x8] sm:$0xff]   ;;  %s3161_s21 = sld [smem:[#allocation29_spill]] }
 0x122   : > { %1773 = vmatprep.subr.bf16.mxu0 %v2392_v0  ;;  %1789 = vmatprep.mubr.msk.bf16.mxu0 %vm2393_vm0, %v2392_v0  ;;  %v1939_v3 = vld [vmem:[%s2848_s9 + $0x10] sm:$0xff]   ;;  %v1946_v4 = vld [vmem:[%s2856_s11] sm:$0xff]   ;;  %v1940_v5 = vld [vmem:[%s2848_s9 + $0x18] sm:$0xff]   ;;  %s3162_s10 = sld [smem:[#allocation33_spill]]  ;;  %v2394_v50 = vmov 0   ;;  %s3164_s8 = sld [smem:[#allocation40_spill]] }
 0x123   : > { %1793 = vmatprep.subr.bf16.mxu1 %v2392_v0  ;;  %1809 = vmatprep.mubr.msk.bf16.mxu1 %vm2393_vm0, %v2392_v0  ;;  %v1947_v6 = vld [vmem:[%s2856_s11 + $0x8] sm:$0xff]   ;;  %v1941_v7 = vld [vmem:[%s2848_s9 + $0x20] sm:$0xff]   ;;  %v1948_v8 = vld [vmem:[%s2856_s11 + $0x10] sm:$0xff]   ;;  %s1683_s27 = sshll.u32 %s2844_s22, 4  ;;  %s3165_s24 = sld [smem:[#allocation42_spill]] }
 0x124   : > { %1774 = vmatpush3.bf16.msra.mxu0 %v1937_v1  ;;  %1794 = vmatpush3.bf16.msra.mxu1 %v1946_v4  ;;  %v1942_v9 = vld [vmem:[%s2848_s9 + $0x28] sm:$0xff]   ;;  %v1949_v10 = vld [vmem:[%s2856_s11 + $0x18] sm:$0xff]   ;;  %v1943_v11 = vld [vmem:[%s2848_s9 + $0x30] sm:$0xff]   ;;  %p3167_p2 = scmp.ne.s32.totalorder %s3141_s16, 0 }
 0x125   : > { %1775 = vmatprep.subr.bf16.mxu0 %v2392_v0  ;;  %1795 = vmatprep.subr.bf16.mxu1 %v2392_v0  ;;  %v1950_v12 = vld [vmem:[%s2856_s11 + $0x20] sm:$0xff]   ;;  %v1944_v13 = vld [vmem:[%s2848_s9 + $0x38] sm:$0xff]   ;;  %v1951_v15 = vld [vmem:[%s2856_s11 + $0x28] sm:$0xff]   ;;  %s3163_s9 = sld [smem:[#allocation34_spill]] }
 0x126   : > { %v1945_v14 = vld [vmem:[#allocation3] sm:$0xff]   ;;  %v1954_v18 = vld [vmem:[%s2872_s4] ss:$8 sps:$4 sm:$0xff]   ;;  %v1956_v19 = vld [vmem:[%s2872_s4 + $0x4] ss:$8 sps:$4 sm:$0xff]  }
 0x127   : > { %v1952_v16 = vld [vmem:[%s2856_s11 + $0x30] sm:$0xff]   ;;  %v1953_v17 = vld [vmem:[%s2856_s11 + $0x38] sm:$0xff]   ;;  %p800_p5 = scmp.lt.s32.totalorder %s3161_s21, 1  ;;  %s1747_s12 = sshll.u32 %s3161_s21, 8 }
 0x128   : > { %1776 = vmatpush3.bf16.msra.mxu0 %v1938_v2  ;;  %1796 = vmatpush3.bf16.msra.mxu1 %v1947_v6  ;;  %v1959_v20 = vld [vmem:[%s2872_s4 + $0x14] ss:$8 sps:$4 sm:$0xff]   ;;  %v1957_v21 = vld [vmem:[%s2872_s4 + $0x10] ss:$8 sps:$4 sm:$0xff]   ;;  %v1962_v22 = vld [vmem:[%s2872_s4 + $0x24] ss:$8 sps:$4 sm:$0xff]  }
 0x129   : > { %1777 = vmatprep.subr.bf16.mxu0 %v2392_v0  ;;  %1797 = vmatprep.subr.bf16.mxu1 %v2392_v0  ;;  %v1960_v23 = vld [vmem:[%s2872_s4 + $0x20] ss:$8 sps:$4 sm:$0xff]   ;;  %v1965_v24 = vld [vmem:[%s2872_s4 + $0x34] ss:$8 sps:$4 sm:$0xff]   ;;  %v1963_v25 = vld [vmem:[%s2872_s4 + $0x30] ss:$8 sps:$4 sm:$0xff]   ;;  %s2948_s20 = scalar_lea.hbm %s3165_s24, %s1747_s12 }
 0x12a   : > { %v1968_v26 = vld [vmem:[%s2872_s4 + $0x44] ss:$8 sps:$4 sm:$0xff]   ;;  %v1966_v27 = vld [vmem:[%s2872_s4 + $0x40] ss:$8 sps:$4 sm:$0xff]   ;;  %s2906_s7 = scalar_select %p800_p5, %s3161_s21, 1 }
 0x12b   : > { %v1700_v33 = vld [vmem:[%s661_s3] ss:$0 sm:$0xff]  ;;  %v1971_v44 = vld [vmem:[%s2872_s4 + $0x54] ss:$8 sps:$4 sm:$0xff]   ;;  %v1974_v46 = vld [vmem:[%s2872_s4 + $0x64] ss:$8 sps:$4 sm:$0xff]  }
 0x12c   : > { %1778 = vmatpush3.bf16.msra.mxu0 %v1939_v3  ;;  %1798 = vmatpush3.bf16.msra.mxu1 %v1948_v8  ;;  %s802_s19 = scalar_lea.vmem %s3162_s10, %s2906_s7  ;;  %s805_s5 = scalar_lea.vmem %s3163_s9, %s2906_s7  ;;  %v1969_v45 = vld [vmem:[%s2872_s4 + $0x50] ss:$8 sps:$4 sm:$0xff]   ;;  %v1972_v47 = vld [vmem:[%s2872_s4 + $0x60] ss:$8 sps:$4 sm:$0xff]   ;;  %v1977_v48 = vld [vmem:[%s2872_s4 + $0x74] ss:$8 sps:$4 sm:$0xff]   ;;  %v1127_v3 = vlaneseq }
 0x12d   : > { %1779 = vmatprep.subr.bf16.mxu0 %v2392_v0  ;;  %1799 = vmatprep.subr.bf16.mxu1 %v2392_v0  ;;  %v1698_v28 = vld [vmem:[%s802_s19] ss:$0 sm:$0xff]  ;;  %s1686_s3 = sshll.u32 %s2906_s7, 1 }
 0x12e   : > { %v1699_v30 = vld [vmem:[%s805_s5] ss:$0 sm:$0xff]  ;;  %v1128_v4 = vshrl.u32 %v1127_v3, 7 }
 0x12f   : > { %v1975_v49 = vld [vmem:[%s2872_s4 + $0x70] ss:$8 sps:$4 sm:$0xff]   ;;  %s791_s4 = scalar_lea.vmem [#allocation18], %s1683_s27 }
 0x130   : > { %1780 = vmatpush3.bf16.msra.mxu0 %v1940_v5  ;;  %1800 = vmatpush3.bf16.msra.mxu1 %v1949_v10  ;;  %v1701_v51 = vld [vmem:[%s678_s23] ss:$0 sm:$0xff]  ;;  %v1129_v5 = vsub.s32 0, %v1128_v4  ;;  %s1326_s14 = sshll.u32 %s791_s4, 4  ;;  %s1287_s23 = scalar_lea.sflag [#allocation5], %s2844_s22  ;;  %s2940_s14 = int_to_ptr.vmem [resolvable:$true] %s1326_s14 }
 0x131   : > { %1781 = vmatprep.subr.bf16.mxu0 %v2392_v0  ;;  %1801 = vmatprep.subr.bf16.mxu1 %v2392_v0  ;;  %v1710_v53 = vld [vmem:[%s686_s28] ss:$0 sm:$0xff]  ;;  %s809_s28 = scalar_lea.vmem %s3164_s8, %s1686_s3  ;;  %s3166_s3 = sld [smem:[#allocation43_spill]] }
 0x132   : > { %v1711_v56 = vld [vmem:[%s694_s2] ss:$0 sm:$0xff]  ;;  %s784_s2 = scalar_lea.vmem [#allocation17], %s1683_s27 }
 0x133   : > { %v1125_v6 = vld [vmem:[%s809_s28] sm:$0x3]  ;;  %s1310_s15 = sshll.u32 %s784_s2, 4  ;;  %s2395_s28 = smov [#allocation17]   ;;  %s2938_s15 = int_to_ptr.vmem [resolvable:$true] %s1310_s15 }
 0x134   : > { %1782 = vmatpush3.bf16.msra.mxu0 %v1941_v7  ;;  %1802 = vmatpush3.bf16.msra.mxu1 %v1950_v12  ;;  %v1133_v7 = vsub.s32 1, %v1128_v4  ;;  %v1130_v8 = vrot.slane %v1125_v6, %v1129_v5  ;;  %s2220_s8 = scalar_lea.vmem %s2938_s15, 256  ;;  %s2224_s27 = sshll.u32 %s2395_s28, 4  ;;  %s2225_s27 = int_to_ptr.vmem [resolvable:$false] %s2224_s27 }
 0x135   : > { %1783 = vmatprep.subr.bf16.mxu0 %v2392_v0  ;;  %1803 = vmatprep.subr.bf16.mxu1 %v2392_v0  ;;  %p2221_p9 = scmp.ne.s32.totalorder %s2938_s15, %s2220_s8  ;;  %s2226_s10 = scalar_lea.vmem %s2225_s27, 512 }
 0x136   : > { %p2227_p6 = scmp.lt.s32.totalorder %s2938_s15, %s2225_s27  ;;  %p2228_p3 = scmp.lt.s32.totalorder %s2226_s10, %s2220_s8 }
 0x137   : > { %s2953_s11 = scalar_lea.hbm %s3166_s3, %s1747_s12  ;;  %p2222_p0 = pnand %p2221_p9, %p3167_p2 }
 0x138   : > { %1784 = vmatpush3.bf16.msra.mxu0 %v1942_v9  ;;  %1804 = vmatpush3.bf16.msra.mxu1 %v1951_v15  ;;  %v1134_v9 = vrot.slane %v1125_v6, %v1133_v7  ;;  %p2229_p1 = por %p2228_p3, %p2227_p6 }
 0x139   : > { %1785 = vmatprep.subr.bf16.mxu0 %v2392_v0  ;;  %1805 = vmatprep.subr.bf16.mxu1 %v2392_v0  ;;  %p2223_p7 = pneg %p2222_p0 }
 0x13b   : > { %p2230_p12 = pnand %p2229_p1, %p2223_p7 }
 0x13c   : > { %1786 = vmatpush3.bf16.msra.mxu0 %v1943_v11  ;;  %1806 = vmatpush3.bf16.msra.mxu1 %v1952_v16 }
 0x13d   : > { %1787 = vmatprep.subr.bf16.mxu0 %v2392_v0  ;;  %1807 = vmatprep.subr.bf16.mxu1 %v2392_v0 }
 0x140   : > { %1788 = vmatpush3.bf16.msra.mxu0 %v1944_v13  ;;  %1808 = vmatpush3.bf16.msra.mxu1 %v1953_v17 }
 0x141   : > { %1217 = vmatprep.subr.bf16.mxu0 %v1956_v19 }
 0x143   : > { %1790 = vmatmul.mubr.bf16.vlgmr.msra.gmra.mrb[0].mxu0 %v1945_v14 }
 0x144   : > { %1218 = vmatpush1.bf16.msra.mxu0 %v1954_v18  ;;  %1249 = vmatprep.mubr.bf16.mxu0 %v2394_v50 }
 0x145   : > { %1219 = vmatprep.subr.bf16.mxu0 %v1959_v20 }
 0x148   : > { %1220 = vmatpush1.bf16.msra.mxu0 %v1957_v21 }
 0x149   : > { %1221 = vmatprep.subr.bf16.mxu0 %v1962_v22 }
 0x14c   : > { %1222 = vmatpush1.bf16.msra.mxu0 %v1960_v23 }
 0x14d   : > { %1223 = vmatprep.subr.bf16.mxu0 %v1965_v24 }
 0x150   : > { %1224 = vmatpush1.bf16.msra.mxu0 %v1963_v25 }
 0x151   : > { %1225 = vmatprep.subr.bf16.mxu0 %v1968_v26 }
 0x154   : > { %1226 = vmatpush1.bf16.msra.mxu0 %v1966_v27 }
 0x155   : > { %1227 = vmatprep.subr.bf16.mxu0 %v1971_v44 }
 0x158   : > { %1228 = vmatpush1.bf16.msra.mxu0 %v1969_v45 }
 0x159   : > { %1229 = vmatprep.subr.bf16.mxu0 %v1974_v46 }
 0x15c   : > { %1230 = vmatpush1.bf16.msra.mxu0 %v1972_v47 }
 0x15d   : > { %1231 = vmatprep.subr.bf16.mxu0 %v1977_v48 }
 0x160   : > { %1232 = vmatpush1.bf16.msra.mxu0 %v1975_v49 }
 0x216   : > { %v930_v29 = vpop.f32.mrb[0].mxu0 }
 0x217   : > { %v953_v31 = vadd.f32 %v1698_v28, %v930_v29  ;;  %v1791_v32 = vpop.f32.mrb[1].mxu0 }
 0x218   : > { %v933_v34 = vpop.f32.mrb[2].mxu0 }
 0x219   : > { %v963_v35 = vmul.f32 %v1699_v30, %v953_v31  ;;  %v954_v36 = vadd.f32 %v1698_v28, %v933_v34  ;;  %v1792_v37 = vpop.f32.mrb[3].mxu0 }
 0x21b   : > { %v971_v38 = vadd.f32 %v1700_v33, %v963_v35  ;;  %v964_v39 = vmul.f32 %v1699_v30, %v954_v36 }
 0x21d   : > { %v972_v40 = vadd.f32 %v1700_v33, %v964_v39  ;;  %v973_v41 = vmax.f32 %v971_v38, 0.0 }
 0x21f   : > { %v974_v42 = vmax.f32 %v972_v40, 0.0 }
 0x221   : > { %v975_v43 = vpack.c.bf16 %v974_v42, %v973_v41 }
 0x223   : > { %1810 = vmatmul.mubr.bf16.vlgmr.msra.gmra.mrb[0].mxu1 %v975_v43 }
 0x2f6   : > { %v1081_v52 = vpop.f32.mrb[0].mxu1 }
 0x2f7   : > { %v1082_v54 = vadd.f32 %v1701_v51, %v1081_v52  ;;  %v1811_v55 = vpop.f32.mrb[1].mxu1 }
 0x2f8   : > { %v1084_v57 = vpop.f32.mrb[2].mxu1 }
 0x2f9   : > { %v1096_v58 = vmul.f32 %v1710_v53, %v1082_v54  ;;  %v1085_v59 = vadd.f32 %v1701_v51, %v1084_v57  ;;  %v1812_v60 = vpop.f32.mrb[3].mxu1 }
 0x2fb   : > { %v1104_v61 = vadd.f32 %v1711_v56, %v1096_v58  ;;  %v1097_v62 = vmul.f32 %v1710_v53, %v1085_v59 }
 0x2fd   : > { %v1105_v63 = vadd.f32 %v1711_v56, %v1097_v62  ;;  %v1106_v0 = vmax.f32 %v1104_v61, 0.0 }
 0x2ff   : > { %v1107_v1 = vmax.f32 %v1105_v63, 0.0 }
 0x301   : > { %v1108_v2 = vpack.c.bf16 %v1107_v1, %v1106_v0 }
 0x303   : > { %1250 = vmatmul.mubr.bf16.vlgmr.msra.gmra.mrb[4].mxu0 %v1108_v2 }
 0x3d6   : > { %v1251_v10 = vpop.f32.mrb[4].mxu0 }
 0x3d7   : > { %v2936_v11 = vadd.f32 %v1251_v10, %v1130_v8  ;;  %v1253_v12 = vpop.f32.mrb[5].mxu0 }
 0x3d8   : > { %v1254_v13 = vadd.f32 %v1253_v12, %v1134_v9  ;;  %v1255_v14 = vpop.f32.mrb[6].mxu0 }
 0x3d9   : > { %1260 = vst [vmem:[%s784_s2] sm:$0xff] %v2936_v11  ;;  %v2943_v15 = vadd.f32 %v1255_v14, %v1130_v8  ;;  %v1257_v16 = vpop.f32.mrb[7].mxu0 }
 0x3da   : > { %1262 = vst [vmem:[%s791_s4] sm:$0xff] %v1254_v13  ;;  %v1266_v17 = vmul.f32 0.5, %v1254_v13  ;;  %v1258_v18 = vadd.f32 %v1257_v16, %v1134_v9 }
 0x3db   : > { %1261 = vst [vmem:[%s784_s2 + $0x8] sm:$0xff] %v2943_v15 }
 0x3dc   : > { %v1268_v19 = vmul.f32 1.442695, %v1266_v17  ;;  %1263 = vst [vmem:[%s791_s4 + $0x8] sm:$0xff] %v1258_v18  ;;  %v1267_v20 = vmul.f32 0.5, %v1258_v18 }
 0x3dd   : > { %2233 = shalt.err (!%p2230_p12)
}
 0x3de   : > { %s2234_s2 = scalar_lea.hbm %s2948_s20, 256  ;;  %s2238_s19 = scalar_lea.hbm %s3165_s24, 512 }
 0x3df   : > { %p2235_p4 = scmp.ne.s32.totalorder %s2948_s20, %s2234_s2  ;;  %p2239_p11 = scmp.lt.u32.totalorder %s2948_s20, %s3165_s24 }
 0x3e0   : > { %p2240_p10 = scmp.lt.u32.totalorder %s2238_s19, %s2234_s2  ;;  %p2242_p9 = scmp.lt.u32.totalorder %s2234_s2, %s2948_s20 }
 0x3e1   : > { %p2236_p8 = pnand %p2235_p4, %p3167_p2 }
 0x3e2   : > { %p2241_p5 = por %p2240_p10, %p2239_p11 }
 0x3e3   : > { %p2237_p13 = pneg %p2236_p8 }
 0x3e4   : > { %p2243_p0 = por %p2242_p9, %p2241_p5 }
 0x3e6   : > { %p2244_p7 = pnand %p2243_p0, %p2237_p13 }
 0x3e8   : > { %2247 = shalt.err (!%p2244_p7)
}
 0x3e9   : > { %s2396_s8 = smov 128   ;;  %s2397_s28 = smov 8  }
 0x3ea   : > { %1831 = dma.vmem_to_hbm [thread:$0]  (%p3167_p2), %s2938_s15, 256, %s2948_s20, %s1287_s23, %s2396_s8, %s2396_s8, %s2397_s28  }
 0x3eb   : > { %s1292_s27 = scalar_lea.sflag [#allocation19], %s2841_s26  ;;  %s2248_s10 = scalar_lea.vmem %s2940_s14, 256 }
 0x3ec   : > { %p2249_p6 = scmp.ne.s32.totalorder %s2940_s14, %s2248_s10  ;;  %s2398_s2 = smov [#allocation18]  }
 0x3ed   : > { %s2252_s4 = sshll.u32 %s2398_s2, 4  ;;  %s2253_s4 = int_to_ptr.vmem [resolvable:$false] %s2252_s4 }
 0x3ee   : > { %p2250_p3 = pnand %p2249_p6, %p3167_p2  ;;  %s2254_s12 = scalar_lea.vmem %s2253_s4, 512 }
 0x3ef   : > { %p2255_p12 = scmp.lt.s32.totalorder %s2940_s14, %s2253_s4  ;;  %p2256_p4 = scmp.lt.s32.totalorder %s2254_s12, %s2248_s10 }
 0x3f0   : > { %p2251_p1 = pneg %p2250_p3 }
 0x3f1   : > { %p2257_p8 = por %p2256_p4, %p2255_p12 }
 0x3f3   : > { %p2258_p13 = pnand %p2257_p8, %p2251_p1 }
 0x3f5   : > { %2261 = shalt.err (!%p2258_p13)
}
 0x3f6   : > { %s2262_s15 = scalar_lea.hbm %s2953_s11, 256  ;;  %s2266_s19 = scalar_lea.hbm %s3166_s3, 512 }
 0x3f7   : > { %p2263_p11 = scmp.ne.s32.totalorder %s2953_s11, %s2262_s15  ;;  %p2267_p9 = scmp.lt.u32.totalorder %s2953_s11, %s3166_s3 }
 0x3f8   : > { %p2268_p0 = scmp.lt.u32.totalorder %s2266_s19, %s2262_s15  ;;  %p2270_p6 = scmp.lt.u32.totalorder %s2262_s15, %s2953_s11 }
 0x3f9   : > { %p2264_p10 = pnand %p2263_p11, %p3167_p2 }
 0x3fa   : > { %p2269_p7 = por %p2268_p0, %p2267_p9 }
 0x3fb   : > { %p2265_p5 = pneg %p2264_p10 }
 0x3fc   : > { %p2271_p3 = por %p2270_p6, %p2269_p7 }
 0x3fe   : > { %p2272_p1 = pnand %p2271_p3, %p2265_p5 }
 0x400   : > { %2275 = shalt.err (!%p2272_p1)
}
 0x401   : > { %1832 = dma.vmem_to_hbm [thread:$0]  (%p3167_p2), %s2940_s14, 256, %s2953_s11, %s1292_s27, %s2396_s8, %s2396_s8, %s2397_s28   ;;  %1978 = vpow2.f32 %v1268_v19  ;;  %v1270_v21 = vmul.f32 1.442695, %v1267_v20 }
 0x402   : > { %s1744_s10 = sshll.u32 %s2906_s7, 4  ;;  %s3168_s12 = sld [smem:[#allocation41_spill]] }
 0x403   : > { %1980 = vpow2.f32 %v1270_v21  ;;  %s1685_s20 = sshll.u32 %s2844_s22, 3  ;;  %s1749_s23 = sshll.u32 %s3161_s21, 7 }
 0x404   : > { %s798_s14 = scalar_lea.vmem [#allocation20], %s1685_s20  ;;  %s3169_s28 = sld [smem:[#allocation44_spill]] }
 0x405   : > { %s1342_s11 = sshll.u32 %s798_s14, 4  ;;  %s2399_s21 = smov [#allocation20]   ;;  %s3023_s11 = int_to_ptr.vmem [resolvable:$true] %s1342_s11 }
 0x406   : > { %s2276_s22 = scalar_lea.vmem %s3023_s11, 128  ;;  %s2280_s9 = sshll.u32 %s2399_s21, 4  ;;  %s2281_s9 = int_to_ptr.vmem [resolvable:$false] %s2280_s9 }
 0x407   : > { %p2277_p12 = scmp.ne.s32.totalorder %s3023_s11, %s2276_s22  ;;  %s2282_s5 = scalar_lea.vmem %s2281_s9, 256 }
 0x408   : > { %s814_s15 = scalar_lea.vmem %s3168_s12, %s1744_s10  ;;  %p2283_p13 = scmp.lt.s32.totalorder %s3023_s11, %s2281_s9 }
 0x409   : > { %v1264_v22 = vld [vmem:[%s814_s15] sm:$0xff]  ;;  %v1265_v24 = vld [vmem:[%s814_s15 + $0x8] sm:$0xff]  ;;  %p2278_p4 = pnand %p2277_p12, %p3167_p2  ;;  %p2284_p11 = scmp.lt.s32.totalorder %s2282_s5, %s2276_s22 }
 0x40a   : > { %s3021_s19 = scalar_lea.hbm %s3169_s28, %s1749_s23 }
 0x40b   : > { %v1979_v23 = vpop.eup %1978  ;;  %p2279_p8 = pneg %p2278_p4  ;;  %p2285_p10 = por %p2284_p11, %p2283_p13 }
 0x40c   : > { %v1272_v25 = vmul.f32 %v1979_v23, %v1264_v22 }
 0x40d   : > { %v1981_v26 = vpop.eup %1980  ;;  %p2286_p5 = pnand %p2285_p10, %p2279_p8 }
 0x40e   : > { %v1274_v27 = vadd.f32 %v1272_v25, %v2936_v11  ;;  %v1273_v28 = vmul.f32 %v1981_v26, %v1265_v24 }
 0x410   : > { %v1275_v29 = vadd.f32 %v1273_v28, %v2943_v15 }
 0x412   : > { %v1753_v30 = vpack.c.bf16 %v1275_v29, %v1274_v27 }
 0x414   : > { %1754 = vst [vmem:[%s798_s14] sm:$0xff] %v1753_v30  }
 0x415   : > { %2289 = shalt.err (!%p2286_p5)
}
 0x416   : > { %s2290_s10 = scalar_lea.hbm %s3021_s19, 128  ;;  %s2294_s12 = scalar_lea.hbm %s3169_s28, 256 }
 0x417   : > { %p2291_p9 = scmp.ne.s32.totalorder %s3021_s19, %s2290_s10  ;;  %p2295_p6 = scmp.lt.u32.totalorder %s3021_s19, %s3169_s28 }
 0x418   : > { %p2296_p3 = scmp.lt.u32.totalorder %s2294_s12, %s2290_s10  ;;  %p2298_p12 = scmp.lt.u32.totalorder %s2290_s10, %s3021_s19 }
 0x419   : > { %p2292_p0 = pnand %p2291_p9, %p3167_p2 }
 0x41a   : > { %p2297_p1 = por %p2296_p3, %p2295_p6 }
 0x41b   : > { %p2293_p7 = pneg %p2292_p0 }
 0x41c   : > { %p2299_p4 = por %p2298_p12, %p2297_p1 }
 0x41e   : > { %p2300_p8 = pnand %p2299_p4, %p2293_p7 }
 0x420   : > { %2303 = shalt.err (!%p2300_p8)
}
 0x421   : > { %s2400_s23 = smov 64   ;;  %s2401_s14 = smov 4  }
 0x422   : > { %1833 = dma.vmem_to_hbm [thread:$0]  (%p3167_p2), %s3023_s11, 128, %s3021_s19, %s1292_s27, %s2400_s23, %s2400_s23, %s2401_s14  }
 0x423 PF: > { %s1357_s7 = sand.u32 1, %s2358_s29   ;;  %p3170_p13 = scmp.ne.s32.totalorder %s3142_s25, 0 }
 0x424   : > { %p3171_p11 = scmp.ge.s32.totalorder %s2378_s18, 2  ;;  %s1358_s8 = scalar_lea.sflag [#allocation5], %s1357_s7 }
 0x426   : > { %p1864_p10 = pnand %p3171_p11, %p3170_p13 }
 0x428   : > { %2349 = dma.done.wait (!%p1864_p10), %s1358_s8, 256  }
 0x429   : > { %2351 = vsyncadd (!%p1864_p10), %s1358_s8, 4294967040  ;;  %s3172_s22 = sadd.s32 4294967294, %s2378_s18  }
 0x42a   : > { %s1366_s21 = sand.u32 1, %s3172_s22  }
 0x42b   : > { %s1367_s9 = scalar_lea.sflag [#allocation19], %s1366_s21 }
 0x42c   : > { %2353 = dma.done.wait (!%p1864_p10), %s1367_s9, 384  }
 0x42d   : > { %2355 = vsyncadd (!%p1864_p10), %s1367_s9, 4294966912  ;;  %s44_s18 = sadd.s32 1, %s2378_s18   ;;  %s3173_s16 = sld [smem:[#allocation28_spill]] }
 0x42e   : > { %p41_p2 = scmp.ge.s32.totalorder %s44_s18, 4   ;;  %s3174_s15 = sld [smem:[#allocation31_spill]] }
 0x42f   : > { %s3175_s26 = sld [smem:[#allocation30_spill]]  ;;  %s3176_s29 = smov %s2362_s30 }
 0x430   :  { %43 = sbr.rel (!%p41_p2) target bundleno = 29 (0x1d), region = 243 }
 0x433   : > { %s3177_s30 = smov %s3173_s16  ;;  %s3178_s16 = smov %s2374_s17 }
 0x435   : > { %s3179_s17 = smov %s3175_s26 }
 0x437   :  { %1381 = vsyncpa [#allocation4], 1 }
 0x438   :  { %1383 = vsyncpa [#allocation4 + $0x1], 1 }
 0x439   :  { %1384 = vsyncpa [#allocation7], 1 }
 0x43a   :  { %1386 = vsyncpa [#allocation7 + $0x1], 1 }
 0x43b   :  { %1387 = vsyncpa [#allocation10], 1 }
 0x43c   :  { %1389 = vsyncpa [#allocation10 + $0x1], 1 }
 0x43d   :  { %1390 = vsyncpa [#allocation13], 1 }
 0x43e   :  { %1392 = vsyncpa [#allocation13 + $0x1], 1 }
 0x43f   :  { %1393 = vsyncpa [#allocation16], 1 }
 0x440   :  { %1395 = vsyncpa [#allocation16 + $0x1], 1 }
 0x441   :  { %1396 = vsyncpa [#allocation5], 1 }
 0x442   :  { %1398 = vsyncpa [#allocation5 + $0x1], 1 }
 0x443   :  { %1399 = vsyncpa [#allocation19], 1 }
 0x444   :  { %1401 = vsyncpa [#allocation19 + $0x1], 1 }

</bundles_post_ra>
